<compile_context>
chip_gen: v7x
topology: tpu7x:2x2x1
jax: 0.10.0
libtpu: 0.0.40
codegen_flags: <defaults>
</compile_context>

<pallas_src>
import functools

import jax
import jax.numpy as jnp
from jax import lax
from jax.experimental import pallas as pl
from jax.experimental.pallas import tpu as pltpu


def _round_up(x, m):
    return (x + m - 1) // m * m


def _pad_gates(w, H, Hp):
    """(In, 4H) -> (In, 4Hp): pad each gate block's output dim from H to Hp."""
    In = w.shape[0]
    w4 = w.reshape(In, 4, H)
    w4 = jnp.pad(w4, ((0, 0), (0, 0), (0, Hp - H)))
    return w4.reshape(In, 4 * Hp)


def _vmem_bytes(tc, Bp, E, Hp, Cp):
    """Approximate VMEM footprint of the pallas_call buffers."""
    emb = 2 * tc * Bp * E * 2                                    # 2x bf16 chunk
    wts = 2 * ((E * 4 * Hp + Hp * 4 * Hp + Hp * Cp) * 2          # bf16 weights
               + (4 * Hp + Cp) * 4)                              # f32 biases
    xg = tc * Bp * 4 * Hp * 2                                    # bf16 scratch
    state = 2 * Bp * Hp * 4                                      # h, c (f32)
    out = 2 * Bp * Cp * 4
    return emb + wts + xg + state + out


def _sentiment_kernel(emb_ref, wih_ref, whh_ref, b_ref, wfc_ref, bfc_ref,
                      out_ref, xg_ref, h_ref, c_ref,
                      *, t_chunk, t_last):
    """One grid step == one chunk of `t_chunk` timesteps.

    emb_ref : (tc*Bp, E)     bf16, time-major rows [t*Bp:(t+1)*Bp]
    wih_ref : (E, 4*Hp)      bf16 (gate-padded), resident
    whh_ref : (Hp, 4*Hp)     bf16 (gate-padded), resident
    b_ref   : (1, 4*Hp)      f32  (b_ih + b_hh, gate-padded)
    wfc_ref : (Hp, Cp)       bf16, resident
    bfc_ref : (1, Cp)        f32  (padded classes = -1e30)
    out_ref : (Bp, Cp)       f32
    xg_ref  : (tc*Bp, 4Hp)   bf16 scratch (hoisted input projection)
    h_ref/c_ref : (Bp, Hp)   f32 scratch, carried across grid steps
    """
    step_idx = pl.program_id(0)
    last_idx = pl.num_programs(0) - 1
    Bp, Hp = h_ref.shape

    @pl.when(step_idx == 0)
    def _():
        h_ref[...] = jnp.zeros_like(h_ref)
        c_ref[...] = jnp.zeros_like(c_ref)

    # Phase 1: hoisted input projection for the whole chunk -> one large,
    # MXU-efficient matmul; LSTM bias folded in here. f32 accumulate, bf16
    # store (halves scratch + per-step load bytes on the serial path).
    xg_ref[...] = (
        jnp.dot(emb_ref[...], wih_ref[...], preferred_element_type=jnp.float32)
        + b_ref[...]).astype(xg_ref.dtype)

    # Phase 2: serial recurrence — only h @ W_hh + elementwise per step.
    # W_hh is streamed from VMEM inside the step (NOT hoisted into a value:
    # a live (Hp,4Hp) bf16 value is ~32 vregs across the fully-unrolled body).
    # TODO(synk): further gain possible by staging W_hh in the MXU with
    #   pltpu.matmul_push_rhs / matmul_acc_lhs / matmul_pop (256-wide panels);
    #   not applied here to keep the kernel portable across v5e/v6e/v7x.
    def lstm_step(t, carry):
        h, c = carry
        row = pl.multiple_of(t * Bp, Bp)
        gates = (xg_ref[pl.ds(row, Bp), :].astype(jnp.float32)
                 + jnp.dot(h.astype(whh_ref.dtype), whh_ref[...],
                           preferred_element_type=jnp.float32))
        # 128-lane-aligned gate slices (i, f, g, o — PyTorch gate order).
        i_g = jax.nn.sigmoid(gates[:, 0 * Hp:1 * Hp])
        f_g = jax.nn.sigmoid(gates[:, 1 * Hp:2 * Hp])
        g_g = jnp.tanh(gates[:, 2 * Hp:3 * Hp])
        o_g = jax.nn.sigmoid(gates[:, 3 * Hp:4 * Hp])
        c_new = f_g * c + i_g * g_g
        h_new = o_g * jnp.tanh(c_new)
        return h_new, c_new

    def run_steps(n_steps):
        # Fully unrolled: gives the LLO scheduler visibility over the whole
        # chunk so independent work of step t+1 hides under step t's MXU.
        h, c = lax.fori_loop(0, n_steps, lstm_step,
                             (h_ref[...], c_ref[...]), unroll=n_steps)
        h_ref[...] = h
        c_ref[...] = c

    if t_last == t_chunk:
        # tc divides T: single clean path, no padding logic anywhere.
        run_steps(t_chunk)
    else:
        # Only the final chunk is short: clamp its trip count instead of
        # running padded steps with per-step freeze selects.
        @pl.when(step_idx < last_idx)
        def _():
            run_steps(t_chunk)

        @pl.when(step_idx == last_idx)
        def _():
            run_steps(t_last)

    # Epilogue on the final chunk: Dropout(eval)=identity, Linear, Softmax.
    @pl.when(step_idx == last_idx)
    def _():
        h_last = h_ref[...]
        logits = (jnp.dot(h_last.astype(wfc_ref.dtype), wfc_ref[...],
                          preferred_element_type=jnp.float32)
                  + bfc_ref[...])                       # (Bp, Cp)
        m = jnp.max(logits, axis=1, keepdims=True)
        e = jnp.exp(logits - m)
        out_ref[...] = e / jnp.sum(e, axis=1, keepdims=True)


@functools.partial(jax.jit, static_argnames=("num_classes", "t_chunk"))
def sentiment_forward(params, x_ids, attention_mask, *, num_classes, t_chunk=32):
    """params: natural-layout dict; x_ids: (B, T) int32; mask: (B, T) or None."""
    compute_dtype = jnp.bfloat16

    emb_table = params["embedding"]                       # (V, E), row 0 = pad
    B, T = x_ids.shape
    E = emb_table.shape[1]
    H = params["w_hh"].shape[0]
    C = num_classes

    # --- padded / aligned sizes ----------------------------------------------
    Bp = _round_up(B, 16)           # 16-row tiles for bf16 operands
    Hp = _round_up(H, 128)          # lane-aligned gates
    Cp = _round_up(C, 128)          # lane-dense output

    # Time-chunk selection: prefer a divisor of T (=> no time padding at all),
    # keep tc*Bp around 256-512 rows, stay inside a conservative VMEM budget
    # (48 MiB usable leaves headroom on v7x's 64 MiB physical VMEM).
    def pick_tc(target):
        target = max(1, min(target, T))
        best = 1
        for cand in range(target, 0, -1):
            if T % cand == 0:
                best = cand
                break
        return best if best >= max(1, target // 2) else target

    VMEM_BUDGET = 48 * 1024 * 1024
    tc = pick_tc(t_chunk)
    while tc > 1 and _vmem_bytes(tc, Bp, E, Hp, Cp) > VMEM_BUDGET:
        tc = pick_tc(max(1, tc // 2))

    Tp = _round_up(T, tc)
    n_chunks = Tp // tc
    t_last = T - (n_chunks - 1) * tc          # valid steps in the final chunk

    # --- JAX glue: time-major gather + mask fold (no HBM transpose pass) -----
    emb_tbe = jnp.take(emb_table.astype(compute_dtype), x_ids.T, axis=0)  # (T,B,E)
    if attention_mask is not None:
        emb_tbe = emb_tbe * attention_mask.T.astype(compute_dtype)[..., None]
    emb_tbe = jnp.pad(emb_tbe, ((0, Tp - T), (0, Bp - B), (0, 0)))
    emb_2d = emb_tbe.reshape(Tp * Bp, E)      # each chunk is one aligned tile

    # Gate-padded, transposed weights: bf16 matmul operands, f32 biases.
    w_ih = _pad_gates(params["w_ih"], H, Hp).astype(compute_dtype)       # (E, 4Hp)
    w_hh = _pad_gates(params["w_hh"], H, Hp)
    w_hh = jnp.pad(w_hh, ((0, Hp - H), (0, 0))).astype(compute_dtype)    # (Hp, 4Hp)
    b_lstm = _pad_gates(params["b_lstm"].reshape(1, 4 * H), H, Hp)
    b_lstm = b_lstm.astype(jnp.float32)                                  # (1, 4Hp)
    w_fc = jnp.pad(params["w_fc"], ((0, Hp - H), (0, Cp - C)))
    w_fc = w_fc.astype(compute_dtype)                                    # (Hp, Cp)
    # NOTE: b_fc must stay f32 so the -1e30 padding does not overflow to -inf.
    b_fc = jnp.pad(params["b_fc"].reshape(1, C), ((0, 0), (0, Cp - C)),
                   constant_values=-1e30).astype(jnp.float32)            # (1, Cp)

    kernel = functools.partial(_sentiment_kernel, t_chunk=tc, t_last=t_last)

    # VMEM limit computed from the actual buffer sizes (+50% headroom),
    # floored at the 32 MiB default and capped at 64 MiB (safe on v7x).
    vmem_limit = int(min(max(int(1.5 * _vmem_bytes(tc, Bp, E, Hp, Cp)),
                             32 * 1024 * 1024), 64 * 1024 * 1024))

    out_padded = pl.pallas_call(
        kernel,
        out_shape=jax.ShapeDtypeStruct((Bp, Cp), jnp.float32),
        grid_spec=pltpu.PrefetchScalarGridSpec(
            num_scalar_prefetch=0,
            grid=(n_chunks,),
            in_specs=[
                pl.BlockSpec((tc * Bp, E), lambda i: (i, 0)),    # streamed chunk
                # Resident weights (constant index maps). pl.Buffered(1) /
                # fp8 w_ih are possible v7x refinements; footprint is tiny
                # at this config so defaults are kept.
                pl.BlockSpec((E, 4 * Hp), lambda i: (0, 0)),
                pl.BlockSpec((Hp, 4 * Hp), lambda i: (0, 0)),
                pl.BlockSpec((1, 4 * Hp), lambda i: (0, 0)),
                pl.BlockSpec((Hp, Cp), lambda i: (0, 0)),
                pl.BlockSpec((1, Cp), lambda i: (0, 0)),
            ],
            out_specs=pl.BlockSpec((Bp, Cp), lambda i: (0, 0)),
            scratch_shapes=[
                pltpu.VMEM((tc * Bp, 4 * Hp), jnp.bfloat16),     # xg (projection)
                pltpu.VMEM((Bp, Hp), jnp.float32),               # h
                pltpu.VMEM((Bp, Hp), jnp.float32),               # c
            ],
        ),
        compiler_params=pltpu.CompilerParams(
            dimension_semantics=("arbitrary",),
            vmem_limit_bytes=vmem_limit,
        ),
    )(emb_2d, w_ih, w_hh, b_lstm, w_fc, b_fc)

    return out_padded[:B, :C]


def sentiment_reference(params, x_ids, attention_mask, *, num_classes):
    """Pure-JAX f32 reference matching the PyTorch forward."""
    emb = jnp.take(params["embedding"], x_ids, axis=0)
    if attention_mask is not None:
        emb = emb * attention_mask[..., None].astype(emb.dtype)
    B = emb.shape[0]
    H = params["w_hh"].shape[0]
    w_ih, w_hh, b = params["w_ih"], params["w_hh"], params["b_lstm"]

    def step(carry, x_t):
        h, c = carry
        gates = x_t @ w_ih + h @ w_hh + b
        i = jax.nn.sigmoid(gates[:, 0 * H:1 * H])
        f = jax.nn.sigmoid(gates[:, 1 * H:2 * H])
        g = jnp.tanh(gates[:, 2 * H:3 * H])
        o = jax.nn.sigmoid(gates[:, 3 * H:4 * H])
        c = f * c + i * g
        h = o * jnp.tanh(c)
        return (h, c), None

    (h, _), _ = lax.scan(step,
                         (jnp.zeros((B, H), jnp.float32),
                          jnp.zeros((B, H), jnp.float32)),
                         jnp.transpose(emb, (1, 0, 2)))
    logits = h @ params["w_fc"] + params["b_fc"]
    return jax.nn.softmax(logits, axis=1)


def init_params(key, vocab_size, embedding_dim, lstm_units, num_classes):
    k0, k1, k2, k3, k4, k5 = jax.random.split(key, 6)
    H = lstm_units
    emb = 0.1 * jax.random.normal(k0, (vocab_size, embedding_dim), jnp.float32)
    emb = emb.at[0].set(0.0)                               # padding_idx=0 -> zero row
    w_ih = 0.1 * jax.random.normal(k1, (embedding_dim, 4 * H), jnp.float32)
    w_hh = 0.1 * jax.random.normal(k2, (H, 4 * H), jnp.float32)
    # combined bias = b_ih + b_hh (PyTorch keeps two; their sum is equivalent)
    b_lstm = 0.05 * jax.random.normal(k3, (4 * H,), jnp.float32)
    w_fc = 0.1 * jax.random.normal(k4, (H, num_classes), jnp.float32)
    b_fc = 0.05 * jax.random.normal(k5, (num_classes,), jnp.float32)
    return dict(embedding=emb, w_ih=w_ih, w_hh=w_hh, b_lstm=b_lstm,
                w_fc=w_fc, b_fc=b_fc)


if __name__ == "__main__":
    # Small config consistent with the module's forward
    VOCAB, EMB, HID, CLS = 100, 32, 32, 3
    B, T = 2, 8

    key = jax.random.PRNGKey(0)
    kp, kx, km = jax.random.split(key, 3)
    params = init_params(kp, VOCAB, EMB, HID, CLS)

    x = jax.random.randint(kx, (B, T), minval=1, maxval=VOCAB, dtype=jnp.int32)
    # pad last two tokens of sample 1 (mask=0, token id 0)
    attention_mask = jnp.ones((B, T), jnp.float32).at[1, -2:].set(0.0)
    x = x.at[1, -2:].set(0)

    out = sentiment_forward(params, x, attention_mask, num_classes=CLS)
    out = jax.block_until_ready(out)

    ref = sentiment_reference(params, x, attention_mask, num_classes=CLS)

    assert out.shape == (B, CLS)
    assert bool(jnp.all(jnp.isfinite(out)))
    assert bool(jnp.allclose(jnp.sum(out, axis=1), 1.0, atol=1e-5))
    # bf16 matmul operands / bf16 xg scratch vs f32 reference -> loose tolerance
    assert bool(jnp.allclose(out, ref, atol=2e-2)), (out, ref)
    print("KERNEL_OK")
</pallas_src>

<mosaic_0001>
module attributes {stable_mosaic.version = 11 : i64} {
  func.func @_sentiment_kernel(%arg0: i32, %arg1: memref<128x32xbf16, #tpu.memory_space<vmem>>, %arg2: memref<32x512xbf16, #tpu.memory_space<vmem>>, %arg3: memref<128x512xbf16, #tpu.memory_space<vmem>>, %arg4: memref<1x512xf32, #tpu.memory_space<vmem>>, %arg5: memref<128x128xbf16, #tpu.memory_space<vmem>>, %arg6: memref<1x128xf32, #tpu.memory_space<vmem>>, %arg7: memref<16x128xf32, #tpu.memory_space<vmem>>, %arg8: memref<128x512xbf16, #tpu.memory_space<vmem>>, %arg9: memref<16x128xf32, #tpu.memory_space<vmem>>, %arg10: memref<16x128xf32, #tpu.memory_space<vmem>>) attributes {dimension_semantics = [#tpu.dimension_semantics<arbitrary>], iteration_bounds = array<i64: 1>, scalar_prefetch = 0 : i64, scratch_operands = 3 : i64, tpu.core_type = #tpu.core_type<tc>, window_params = [{transform_indices = @transform_0, window_bounds = array<i64: 128, 32>}, {pipeline_mode = #tpu.pipeline_mode<synchronous>, transform_indices = @transform_1, window_bounds = array<i64: 32, 512>}, {pipeline_mode = #tpu.pipeline_mode<synchronous>, transform_indices = @transform_2, window_bounds = array<i64: 128, 512>}, {pipeline_mode = #tpu.pipeline_mode<synchronous>, transform_indices = @transform_3, window_bounds = array<i64: 1, 512>}, {pipeline_mode = #tpu.pipeline_mode<synchronous>, transform_indices = @transform_4, window_bounds = array<i64: 128, 128>}, {pipeline_mode = #tpu.pipeline_mode<synchronous>, transform_indices = @transform_5, window_bounds = array<i64: 1, 128>}, {pipeline_mode = #tpu.pipeline_mode<synchronous>, transform_indices = @transform_6, window_bounds = array<i64: 16, 128>}]} {
    %c0_i32 = arith.constant 0 : i32
    %0 = arith.cmpi eq, %arg0, %c0_i32 : i32
    %1 = arith.extui %0 : i1 to i32
    %c0_i32_0 = arith.constant 0 : i32
    %2 = arith.cmpi ne, %1, %c0_i32_0 : i32
    scf.if %2 {
      %cst_82 = arith.constant 0.000000e+00 : f32
      %290 = vector.broadcast %cst_82 : f32 to vector<16x128xf32>
      %c0_83 = arith.constant 0 : index
      %c0_84 = arith.constant 0 : index
      %291 = vector.load %arg9[%c0_83, %c0_84] : memref<16x128xf32, #tpu.memory_space<vmem>>, vector<16x128xf32>
      tpu.vector_store %arg9[%c0_83, %c0_84], %290 {strides = array<i32>} : memref<16x128xf32, #tpu.memory_space<vmem>>, vector<16x128xf32>,
      %cst_85 = arith.constant 0.000000e+00 : f32
      %292 = vector.broadcast %cst_85 : f32 to vector<16x128xf32>
      %c0_86 = arith.constant 0 : index
      %c0_87 = arith.constant 0 : index
      %293 = vector.load %arg10[%c0_86, %c0_87] : memref<16x128xf32, #tpu.memory_space<vmem>>, vector<16x128xf32>
      tpu.vector_store %arg10[%c0_86, %c0_87], %292 {strides = array<i32>} : memref<16x128xf32, #tpu.memory_space<vmem>>, vector<16x128xf32>,
    } else {
    }
    %c0 = arith.constant 0 : index
    %c0_1 = arith.constant 0 : index
    %3 = vector.load %arg1[%c0, %c0_1] : memref<128x32xbf16, #tpu.memory_space<vmem>>, vector<128x32xbf16>
    %c0_2 = arith.constant 0 : index
    %c0_3 = arith.constant 0 : index
    %4 = vector.load %arg2[%c0_2, %c0_3] : memref<32x512xbf16, #tpu.memory_space<vmem>>, vector<32x512xbf16>
    %cst = arith.constant dense<0.000000e+00> : vector<128x512xf32>
    %5 = tpu.matmul %3, %4, %cst {dimension_numbers = #tpu.dot_dimension_numbers<[1], [0], [0], [1], [0, 0, 1, 1], [], []>} : vector<128x32xbf16>, vector<32x512xbf16>, vector<128x512xf32> -> vector<128x512xf32>
    %c0_4 = arith.constant 0 : index
    %c0_5 = arith.constant 0 : index
    %6 = vector.load %arg4[%c0_4, %c0_5] : memref<1x512xf32, #tpu.memory_space<vmem>>, vector<1x512xf32>
    %7 = vector.broadcast %6 : vector<1x512xf32> to vector<128x512xf32>
    %8 = arith.addf %5, %7 : vector<128x512xf32>
    %9 = arith.truncf %8 : vector<128x512xf32> to vector<128x512xbf16>
    %c0_6 = arith.constant 0 : index
    %c0_7 = arith.constant 0 : index
    %10 = vector.load %arg8[%c0_6, %c0_7] : memref<128x512xbf16, #tpu.memory_space<vmem>>, vector<128x512xbf16>
    tpu.vector_store %arg8[%c0_6, %c0_7], %9 {strides = array<i32>} : memref<128x512xbf16, #tpu.memory_space<vmem>>, vector<128x512xbf16>,
    %c0_8 = arith.constant 0 : index
    %c0_9 = arith.constant 0 : index
    %11 = vector.load %arg9[%c0_8, %c0_9] : memref<16x128xf32, #tpu.memory_space<vmem>>, vector<16x128xf32>
    %c0_10 = arith.constant 0 : index
    %c0_11 = arith.constant 0 : index
    %12 = vector.load %arg10[%c0_10, %c0_11] : memref<16x128xf32, #tpu.memory_space<vmem>>, vector<16x128xf32>
    %c0_i32_12 = arith.constant 0 : i32
    %c16_i32 = arith.constant 16 : i32
    %13 = arith.muli %c0_i32_12, %c16_i32 : i32
    %14 = tpu.assume_multiple %13, 16 : i32
    %15 = arith.index_cast %14 : i32 to index
    %c0_13 = arith.constant 0 : index
    %16 = vector.load %arg8[%15, %c0_13] : memref<128x512xbf16, #tpu.memory_space<vmem>>, vector<16x512xbf16>
    %17 = arith.extf %16 : vector<16x512xbf16> to vector<16x512xf32>
    %18 = arith.truncf %11 : vector<16x128xf32> to vector<16x128xbf16>
    %c0_14 = arith.constant 0 : index
    %c0_15 = arith.constant 0 : index
    %19 = vector.load %arg3[%c0_14, %c0_15] : memref<128x512xbf16, #tpu.memory_space<vmem>>, vector<128x512xbf16>
    %cst_16 = arith.constant dense<0.000000e+00> : vector<16x512xf32>
    %20 = tpu.matmul %18, %19, %cst_16 {dimension_numbers = #tpu.dot_dimension_numbers<[1], [0], [0], [1], [0, 0, 1, 1], [], []>} : vector<16x128xbf16>, vector<128x512xbf16>, vector<16x512xf32> -> vector<16x512xf32>
    %21 = arith.addf %17, %20 : vector<16x512xf32>
    %22 = vector.extract_strided_slice %21 {offsets = [0, 0], sizes = [16, 128], strides = [1, 1]} : vector<16x512xf32> to vector<16x128xf32>
    %23 = arith.negf %22 : vector<16x128xf32>
    %24 = math.exp %23 : vector<16x128xf32>
    %cst_17 = arith.constant 1.000000e+00 : f32
    %25 = vector.broadcast %cst_17 : f32 to vector<16x128xf32>
    %26 = arith.addf %25, %24 : vector<16x128xf32>
    %27 = arith.divf %25, %26 : vector<16x128xf32>
    %28 = vector.extract_strided_slice %21 {offsets = [0, 128], sizes = [16, 128], strides = [1, 1]} : vector<16x512xf32> to vector<16x128xf32>
    %29 = arith.negf %28 : vector<16x128xf32>
    %30 = math.exp %29 : vector<16x128xf32>
    %cst_18 = arith.constant 1.000000e+00 : f32
    %31 = vector.broadcast %cst_18 : f32 to vector<16x128xf32>
    %32 = arith.addf %31, %30 : vector<16x128xf32>
    %33 = arith.divf %31, %32 : vector<16x128xf32>
    %34 = vector.extract_strided_slice %21 {offsets = [0, 256], sizes = [16, 128], strides = [1, 1]} : vector<16x512xf32> to vector<16x128xf32>
    %35 = math.tanh %34 : vector<16x128xf32>
    %36 = vector.extract_strided_slice %21 {offsets = [0, 384], sizes = [16, 128], strides = [1, 1]} : vector<16x512xf32> to vector<16x128xf32>
    %37 = arith.negf %36 : vector<16x128xf32>
    %38 = math.exp %37 : vector<16x128xf32>
    %cst_19 = arith.constant 1.000000e+00 : f32
    %39 = vector.broadcast %cst_19 : f32 to vector<16x128xf32>
    %40 = arith.addf %39, %38 : vector<16x128xf32>
    %41 = arith.divf %39, %40 : vector<16x128xf32>
    %42 = arith.mulf %33, %12 : vector<16x128xf32>
    %43 = arith.mulf %27, %35 : vector<16x128xf32>
    %44 = arith.addf %42, %43 : vector<16x128xf32>
    %45 = math.tanh %44 : vector<16x128xf32>
    %46 = arith.mulf %41, %45 : vector<16x128xf32>
    %c1_i32 = arith.constant 1 : i32
    %c16_i32_20 = arith.constant 16 : i32
    %47 = arith.muli %c1_i32, %c16_i32_20 : i32
    %48 = tpu.assume_multiple %47, 16 : i32
    %49 = arith.index_cast %48 : i32 to index
    %c0_21 = arith.constant 0 : index
    %50 = vector.load %arg8[%49, %c0_21] : memref<128x512xbf16, #tpu.memory_space<vmem>>, vector<16x512xbf16>
    %51 = arith.extf %50 : vector<16x512xbf16> to vector<16x512xf32>
    %52 = arith.truncf %46 : vector<16x128xf32> to vector<16x128xbf16>
    %c0_22 = arith.constant 0 : index
    %c0_23 = arith.constant 0 : index
    %53 = vector.load %arg3[%c0_22, %c0_23] : memref<128x512xbf16, #tpu.memory_space<vmem>>, vector<128x512xbf16>
    %cst_24 = arith.constant dense<0.000000e+00> : vector<16x512xf32>
    %54 = tpu.matmul %52, %53, %cst_24 {dimension_numbers = #tpu.dot_dimension_numbers<[1], [0], [0], [1], [0, 0, 1, 1], [], []>} : vector<16x128xbf16>, vector<128x512xbf16>, vector<16x512xf32> -> vector<16x512xf32>
    %55 = arith.addf %51, %54 : vector<16x512xf32>
    %56 = vector.extract_strided_slice %55 {offsets = [0, 0], sizes = [16, 128], strides = [1, 1]} : vector<16x512xf32> to vector<16x128xf32>
    %57 = arith.negf %56 : vector<16x128xf32>
    %58 = math.exp %57 : vector<16x128xf32>
    %cst_25 = arith.constant 1.000000e+00 : f32
    %59 = vector.broadcast %cst_25 : f32 to vector<16x128xf32>
    %60 = arith.addf %59, %58 : vector<16x128xf32>
    %61 = arith.divf %59, %60 : vector<16x128xf32>
    %62 = vector.extract_strided_slice %55 {offsets = [0, 128], sizes = [16, 128], strides = [1, 1]} : vector<16x512xf32> to vector<16x128xf32>
    %63 = arith.negf %62 : vector<16x128xf32>
    %64 = math.exp %63 : vector<16x128xf32>
    %cst_26 = arith.constant 1.000000e+00 : f32
    %65 = vector.broadcast %cst_26 : f32 to vector<16x128xf32>
    %66 = arith.addf %65, %64 : vector<16x128xf32>
    %67 = arith.divf %65, %66 : vector<16x128xf32>
    %68 = vector.extract_strided_slice %55 {offsets = [0, 256], sizes = [16, 128], strides = [1, 1]} : vector<16x512xf32> to vector<16x128xf32>
    %69 = math.tanh %68 : vector<16x128xf32>
    %70 = vector.extract_strided_slice %55 {offsets = [0, 384], sizes = [16, 128], strides = [1, 1]} : vector<16x512xf32> to vector<16x128xf32>
    %71 = arith.negf %70 : vector<16x128xf32>
    %72 = math.exp %71 : vector<16x128xf32>
    %cst_27 = arith.constant 1.000000e+00 : f32
    %73 = vector.broadcast %cst_27 : f32 to vector<16x128xf32>
    %74 = arith.addf %73, %72 : vector<16x128xf32>
    %75 = arith.divf %73, %74 : vector<16x128xf32>
    %76 = arith.mulf %67, %44 : vector<16x128xf32>
    %77 = arith.mulf %61, %69 : vector<16x128xf32>
    %78 = arith.addf %76, %77 : vector<16x128xf32>
    %79 = math.tanh %78 : vector<16x128xf32>
    %80 = arith.mulf %75, %79 : vector<16x128xf32>
    %c2_i32 = arith.constant 2 : i32
    %c16_i32_28 = arith.constant 16 : i32
    %81 = arith.muli %c2_i32, %c16_i32_28 : i32
    %82 = tpu.assume_multiple %81, 16 : i32
    %83 = arith.index_cast %82 : i32 to index
    %c0_29 = arith.constant 0 : index
    %84 = vector.load %arg8[%83, %c0_29] : memref<128x512xbf16, #tpu.memory_space<vmem>>, vector<16x512xbf16>
    %85 = arith.extf %84 : vector<16x512xbf16> to vector<16x512xf32>
    %86 = arith.truncf %80 : vector<16x128xf32> to vector<16x128xbf16>
    %c0_30 = arith.constant 0 : index
    %c0_31 = arith.constant 0 : index
    %87 = vector.load %arg3[%c0_30, %c0_31] : memref<128x512xbf16, #tpu.memory_space<vmem>>, vector<128x512xbf16>
    %cst_32 = arith.constant dense<0.000000e+00> : vector<16x512xf32>
    %88 = tpu.matmul %86, %87, %cst_32 {dimension_numbers = #tpu.dot_dimension_numbers<[1], [0], [0], [1], [0, 0, 1, 1], [], []>} : vector<16x128xbf16>, vector<128x512xbf16>, vector<16x512xf32> -> vector<16x512xf32>
    %89 = arith.addf %85, %88 : vector<16x512xf32>
    %90 = vector.extract_strided_slice %89 {offsets = [0, 0], sizes = [16, 128], strides = [1, 1]} : vector<16x512xf32> to vector<16x128xf32>
    %91 = arith.negf %90 : vector<16x128xf32>
    %92 = math.exp %91 : vector<16x128xf32>
    %cst_33 = arith.constant 1.000000e+00 : f32
    %93 = vector.broadcast %cst_33 : f32 to vector<16x128xf32>
    %94 = arith.addf %93, %92 : vector<16x128xf32>
    %95 = arith.divf %93, %94 : vector<16x128xf32>
    %96 = vector.extract_strided_slice %89 {offsets = [0, 128], sizes = [16, 128], strides = [1, 1]} : vector<16x512xf32> to vector<16x128xf32>
    %97 = arith.negf %96 : vector<16x128xf32>
    %98 = math.exp %97 : vector<16x128xf32>
    %cst_34 = arith.constant 1.000000e+00 : f32
    %99 = vector.broadcast %cst_34 : f32 to vector<16x128xf32>
    %100 = arith.addf %99, %98 : vector<16x128xf32>
    %101 = arith.divf %99, %100 : vector<16x128xf32>
    %102 = vector.extract_strided_slice %89 {offsets = [0, 256], sizes = [16, 128], strides = [1, 1]} : vector<16x512xf32> to vector<16x128xf32>
    %103 = math.tanh %102 : vector<16x128xf32>
    %104 = vector.extract_strided_slice %89 {offsets = [0, 384], sizes = [16, 128], strides = [1, 1]} : vector<16x512xf32> to vector<16x128xf32>
    %105 = arith.negf %104 : vector<16x128xf32>
    %106 = math.exp %105 : vector<16x128xf32>
    %cst_35 = arith.constant 1.000000e+00 : f32
    %107 = vector.broadcast %cst_35 : f32 to vector<16x128xf32>
    %108 = arith.addf %107, %106 : vector<16x128xf32>
    %109 = arith.divf %107, %108 : vector<16x128xf32>
    %110 = arith.mulf %101, %78 : vector<16x128xf32>
    %111 = arith.mulf %95, %103 : vector<16x128xf32>
    %112 = arith.addf %110, %111 : vector<16x128xf32>
    %113 = math.tanh %112 : vector<16x128xf32>
    %114 = arith.mulf %109, %113 : vector<16x128xf32>
    %c3_i32 = arith.constant 3 : i32
    %c16_i32_36 = arith.constant 16 : i32
    %115 = arith.muli %c3_i32, %c16_i32_36 : i32
    %116 = tpu.assume_multiple %115, 16 : i32
    %117 = arith.index_cast %116 : i32 to index
    %c0_37 = arith.constant 0 : index
    %118 = vector.load %arg8[%117, %c0_37] : memref<128x512xbf16, #tpu.memory_space<vmem>>, vector<16x512xbf16>
    %119 = arith.extf %118 : vector<16x512xbf16> to vector<16x512xf32>
    %120 = arith.truncf %114 : vector<16x128xf32> to vector<16x128xbf16>
    %c0_38 = arith.constant 0 : index
    %c0_39 = arith.constant 0 : index
    %121 = vector.load %arg3[%c0_38, %c0_39] : memref<128x512xbf16, #tpu.memory_space<vmem>>, vector<128x512xbf16>
    %cst_40 = arith.constant dense<0.000000e+00> : vector<16x512xf32>
    %122 = tpu.matmul %120, %121, %cst_40 {dimension_numbers = #tpu.dot_dimension_numbers<[1], [0], [0], [1], [0, 0, 1, 1], [], []>} : vector<16x128xbf16>, vector<128x512xbf16>, vector<16x512xf32> -> vector<16x512xf32>
    %123 = arith.addf %119, %122 : vector<16x512xf32>
    %124 = vector.extract_strided_slice %123 {offsets = [0, 0], sizes = [16, 128], strides = [1, 1]} : vector<16x512xf32> to vector<16x128xf32>
    %125 = arith.negf %124 : vector<16x128xf32>
    %126 = math.exp %125 : vector<16x128xf32>
    %cst_41 = arith.constant 1.000000e+00 : f32
    %127 = vector.broadcast %cst_41 : f32 to vector<16x128xf32>
    %128 = arith.addf %127, %126 : vector<16x128xf32>
    %129 = arith.divf %127, %128 : vector<16x128xf32>
    %130 = vector.extract_strided_slice %123 {offsets = [0, 128], sizes = [16, 128], strides = [1, 1]} : vector<16x512xf32> to vector<16x128xf32>
    %131 = arith.negf %130 : vector<16x128xf32>
    %132 = math.exp %131 : vector<16x128xf32>
    %cst_42 = arith.constant 1.000000e+00 : f32
    %133 = vector.broadcast %cst_42 : f32 to vector<16x128xf32>
    %134 = arith.addf %133, %132 : vector<16x128xf32>
    %135 = arith.divf %133, %134 : vector<16x128xf32>
    %136 = vector.extract_strided_slice %123 {offsets = [0, 256], sizes = [16, 128], strides = [1, 1]} : vector<16x512xf32> to vector<16x128xf32>
    %137 = math.tanh %136 : vector<16x128xf32>
    %138 = vector.extract_strided_slice %123 {offsets = [0, 384], sizes = [16, 128], strides = [1, 1]} : vector<16x512xf32> to vector<16x128xf32>
    %139 = arith.negf %138 : vector<16x128xf32>
    %140 = math.exp %139 : vector<16x128xf32>
    %cst_43 = arith.constant 1.000000e+00 : f32
    %141 = vector.broadcast %cst_43 : f32 to vector<16x128xf32>
    %142 = arith.addf %141, %140 : vector<16x128xf32>
    %143 = arith.divf %141, %142 : vector<16x128xf32>
    %144 = arith.mulf %135, %112 : vector<16x128xf32>
    %145 = arith.mulf %129, %137 : vector<16x128xf32>
    %146 = arith.addf %144, %145 : vector<16x128xf32>
    %147 = math.tanh %146 : vector<16x128xf32>
    %148 = arith.mulf %143, %147 : vector<16x128xf32>
    %c4_i32 = arith.constant 4 : i32
    %c16_i32_44 = arith.constant 16 : i32
    %149 = arith.muli %c4_i32, %c16_i32_44 : i32
    %150 = tpu.assume_multiple %149, 16 : i32
    %151 = arith.index_cast %150 : i32 to index
    %c0_45 = arith.constant 0 : index
    %152 = vector.load %arg8[%151, %c0_45] : memref<128x512xbf16, #tpu.memory_space<vmem>>, vector<16x512xbf16>
    %153 = arith.extf %152 : vector<16x512xbf16> to vector<16x512xf32>
    %154 = arith.truncf %148 : vector<16x128xf32> to vector<16x128xbf16>
    %c0_46 = arith.constant 0 : index
    %c0_47 = arith.constant 0 : index
    %155 = vector.load %arg3[%c0_46, %c0_47] : memref<128x512xbf16, #tpu.memory_space<vmem>>, vector<128x512xbf16>
    %cst_48 = arith.constant dense<0.000000e+00> : vector<16x512xf32>
    %156 = tpu.matmul %154, %155, %cst_48 {dimension_numbers = #tpu.dot_dimension_numbers<[1], [0], [0], [1], [0, 0, 1, 1], [], []>} : vector<16x128xbf16>, vector<128x512xbf16>, vector<16x512xf32> -> vector<16x512xf32>
    %157 = arith.addf %153, %156 : vector<16x512xf32>
    %158 = vector.extract_strided_slice %157 {offsets = [0, 0], sizes = [16, 128], strides = [1, 1]} : vector<16x512xf32> to vector<16x128xf32>
    %159 = arith.negf %158 : vector<16x128xf32>
    %160 = math.exp %159 : vector<16x128xf32>
    %cst_49 = arith.constant 1.000000e+00 : f32
    %161 = vector.broadcast %cst_49 : f32 to vector<16x128xf32>
    %162 = arith.addf %161, %160 : vector<16x128xf32>
    %163 = arith.divf %161, %162 : vector<16x128xf32>
    %164 = vector.extract_strided_slice %157 {offsets = [0, 128], sizes = [16, 128], strides = [1, 1]} : vector<16x512xf32> to vector<16x128xf32>
    %165 = arith.negf %164 : vector<16x128xf32>
    %166 = math.exp %165 : vector<16x128xf32>
    %cst_50 = arith.constant 1.000000e+00 : f32
    %167 = vector.broadcast %cst_50 : f32 to vector<16x128xf32>
    %168 = arith.addf %167, %166 : vector<16x128xf32>
    %169 = arith.divf %167, %168 : vector<16x128xf32>
    %170 = vector.extract_strided_slice %157 {offsets = [0, 256], sizes = [16, 128], strides = [1, 1]} : vector<16x512xf32> to vector<16x128xf32>
    %171 = math.tanh %170 : vector<16x128xf32>
    %172 = vector.extract_strided_slice %157 {offsets = [0, 384], sizes = [16, 128], strides = [1, 1]} : vector<16x512xf32> to vector<16x128xf32>
    %173 = arith.negf %172 : vector<16x128xf32>
    %174 = math.exp %173 : vector<16x128xf32>
    %cst_51 = arith.constant 1.000000e+00 : f32
    %175 = vector.broadcast %cst_51 : f32 to vector<16x128xf32>
    %176 = arith.addf %175, %174 : vector<16x128xf32>
    %177 = arith.divf %175, %176 : vector<16x128xf32>
    %178 = arith.mulf %169, %146 : vector<16x128xf32>
    %179 = arith.mulf %163, %171 : vector<16x128xf32>
    %180 = arith.addf %178, %179 : vector<16x128xf32>
    %181 = math.tanh %180 : vector<16x128xf32>
    %182 = arith.mulf %177, %181 : vector<16x128xf32>
    %c5_i32 = arith.constant 5 : i32
    %c16_i32_52 = arith.constant 16 : i32
    %183 = arith.muli %c5_i32, %c16_i32_52 : i32
    %184 = tpu.assume_multiple %183, 16 : i32
    %185 = arith.index_cast %184 : i32 to index
    %c0_53 = arith.constant 0 : index
    %186 = vector.load %arg8[%185, %c0_53] : memref<128x512xbf16, #tpu.memory_space<vmem>>, vector<16x512xbf16>
    %187 = arith.extf %186 : vector<16x512xbf16> to vector<16x512xf32>
    %188 = arith.truncf %182 : vector<16x128xf32> to vector<16x128xbf16>
    %c0_54 = arith.constant 0 : index
    %c0_55 = arith.constant 0 : index
    %189 = vector.load %arg3[%c0_54, %c0_55] : memref<128x512xbf16, #tpu.memory_space<vmem>>, vector<128x512xbf16>
    %cst_56 = arith.constant dense<0.000000e+00> : vector<16x512xf32>
    %190 = tpu.matmul %188, %189, %cst_56 {dimension_numbers = #tpu.dot_dimension_numbers<[1], [0], [0], [1], [0, 0, 1, 1], [], []>} : vector<16x128xbf16>, vector<128x512xbf16>, vector<16x512xf32> -> vector<16x512xf32>
    %191 = arith.addf %187, %190 : vector<16x512xf32>
    %192 = vector.extract_strided_slice %191 {offsets = [0, 0], sizes = [16, 128], strides = [1, 1]} : vector<16x512xf32> to vector<16x128xf32>
    %193 = arith.negf %192 : vector<16x128xf32>
    %194 = math.exp %193 : vector<16x128xf32>
    %cst_57 = arith.constant 1.000000e+00 : f32
    %195 = vector.broadcast %cst_57 : f32 to vector<16x128xf32>
    %196 = arith.addf %195, %194 : vector<16x128xf32>
    %197 = arith.divf %195, %196 : vector<16x128xf32>
    %198 = vector.extract_strided_slice %191 {offsets = [0, 128], sizes = [16, 128], strides = [1, 1]} : vector<16x512xf32> to vector<16x128xf32>
    %199 = arith.negf %198 : vector<16x128xf32>
    %200 = math.exp %199 : vector<16x128xf32>
    %cst_58 = arith.constant 1.000000e+00 : f32
    %201 = vector.broadcast %cst_58 : f32 to vector<16x128xf32>
    %202 = arith.addf %201, %200 : vector<16x128xf32>
    %203 = arith.divf %201, %202 : vector<16x128xf32>
    %204 = vector.extract_strided_slice %191 {offsets = [0, 256], sizes = [16, 128], strides = [1, 1]} : vector<16x512xf32> to vector<16x128xf32>
    %205 = math.tanh %204 : vector<16x128xf32>
    %206 = vector.extract_strided_slice %191 {offsets = [0, 384], sizes = [16, 128], strides = [1, 1]} : vector<16x512xf32> to vector<16x128xf32>
    %207 = arith.negf %206 : vector<16x128xf32>
    %208 = math.exp %207 : vector<16x128xf32>
    %cst_59 = arith.constant 1.000000e+00 : f32
    %209 = vector.broadcast %cst_59 : f32 to vector<16x128xf32>
    %210 = arith.addf %209, %208 : vector<16x128xf32>
    %211 = arith.divf %209, %210 : vector<16x128xf32>
    %212 = arith.mulf %203, %180 : vector<16x128xf32>
    %213 = arith.mulf %197, %205 : vector<16x128xf32>
    %214 = arith.addf %212, %213 : vector<16x128xf32>
    %215 = math.tanh %214 : vector<16x128xf32>
    %216 = arith.mulf %211, %215 : vector<16x128xf32>
    %c6_i32 = arith.constant 6 : i32
    %c16_i32_60 = arith.constant 16 : i32
    %217 = arith.muli %c6_i32, %c16_i32_60 : i32
    %218 = tpu.assume_multiple %217, 16 : i32
    %219 = arith.index_cast %218 : i32 to index
    %c0_61 = arith.constant 0 : index
    %220 = vector.load %arg8[%219, %c0_61] : memref<128x512xbf16, #tpu.memory_space<vmem>>, vector<16x512xbf16>
    %221 = arith.extf %220 : vector<16x512xbf16> to vector<16x512xf32>
    %222 = arith.truncf %216 : vector<16x128xf32> to vector<16x128xbf16>
    %c0_62 = arith.constant 0 : index
    %c0_63 = arith.constant 0 : index
    %223 = vector.load %arg3[%c0_62, %c0_63] : memref<128x512xbf16, #tpu.memory_space<vmem>>, vector<128x512xbf16>
    %cst_64 = arith.constant dense<0.000000e+00> : vector<16x512xf32>
    %224 = tpu.matmul %222, %223, %cst_64 {dimension_numbers = #tpu.dot_dimension_numbers<[1], [0], [0], [1], [0, 0, 1, 1], [], []>} : vector<16x128xbf16>, vector<128x512xbf16>, vector<16x512xf32> -> vector<16x512xf32>
    %225 = arith.addf %221, %224 : vector<16x512xf32>
    %226 = vector.extract_strided_slice %225 {offsets = [0, 0], sizes = [16, 128], strides = [1, 1]} : vector<16x512xf32> to vector<16x128xf32>
    %227 = arith.negf %226 : vector<16x128xf32>
    %228 = math.exp %227 : vector<16x128xf32>
    %cst_65 = arith.constant 1.000000e+00 : f32
    %229 = vector.broadcast %cst_65 : f32 to vector<16x128xf32>
    %230 = arith.addf %229, %228 : vector<16x128xf32>
    %231 = arith.divf %229, %230 : vector<16x128xf32>
    %232 = vector.extract_strided_slice %225 {offsets = [0, 128], sizes = [16, 128], strides = [1, 1]} : vector<16x512xf32> to vector<16x128xf32>
    %233 = arith.negf %232 : vector<16x128xf32>
    %234 = math.exp %233 : vector<16x128xf32>
    %cst_66 = arith.constant 1.000000e+00 : f32
    %235 = vector.broadcast %cst_66 : f32 to vector<16x128xf32>
    %236 = arith.addf %235, %234 : vector<16x128xf32>
    %237 = arith.divf %235, %236 : vector<16x128xf32>
    %238 = vector.extract_strided_slice %225 {offsets = [0, 256], sizes = [16, 128], strides = [1, 1]} : vector<16x512xf32> to vector<16x128xf32>
    %239 = math.tanh %238 : vector<16x128xf32>
    %240 = vector.extract_strided_slice %225 {offsets = [0, 384], sizes = [16, 128], strides = [1, 1]} : vector<16x512xf32> to vector<16x128xf32>
    %241 = arith.negf %240 : vector<16x128xf32>
    %242 = math.exp %241 : vector<16x128xf32>
    %cst_67 = arith.constant 1.000000e+00 : f32
    %243 = vector.broadcast %cst_67 : f32 to vector<16x128xf32>
    %244 = arith.addf %243, %242 : vector<16x128xf32>
    %245 = arith.divf %243, %244 : vector<16x128xf32>
    %246 = arith.mulf %237, %214 : vector<16x128xf32>
    %247 = arith.mulf %231, %239 : vector<16x128xf32>
    %248 = arith.addf %246, %247 : vector<16x128xf32>
    %249 = math.tanh %248 : vector<16x128xf32>
    %250 = arith.mulf %245, %249 : vector<16x128xf32>
    %c7_i32 = arith.constant 7 : i32
    %c16_i32_68 = arith.constant 16 : i32
    %251 = arith.muli %c7_i32, %c16_i32_68 : i32
    %252 = tpu.assume_multiple %251, 16 : i32
    %253 = arith.index_cast %252 : i32 to index
    %c0_69 = arith.constant 0 : index
    %254 = vector.load %arg8[%253, %c0_69] : memref<128x512xbf16, #tpu.memory_space<vmem>>, vector<16x512xbf16>
    %255 = arith.extf %254 : vector<16x512xbf16> to vector<16x512xf32>
    %256 = arith.truncf %250 : vector<16x128xf32> to vector<16x128xbf16>
    %c0_70 = arith.constant 0 : index
    %c0_71 = arith.constant 0 : index
    %257 = vector.load %arg3[%c0_70, %c0_71] : memref<128x512xbf16, #tpu.memory_space<vmem>>, vector<128x512xbf16>
    %cst_72 = arith.constant dense<0.000000e+00> : vector<16x512xf32>
    %258 = tpu.matmul %256, %257, %cst_72 {dimension_numbers = #tpu.dot_dimension_numbers<[1], [0], [0], [1], [0, 0, 1, 1], [], []>} : vector<16x128xbf16>, vector<128x512xbf16>, vector<16x512xf32> -> vector<16x512xf32>
    %259 = arith.addf %255, %258 : vector<16x512xf32>
    %260 = vector.extract_strided_slice %259 {offsets = [0, 0], sizes = [16, 128], strides = [1, 1]} : vector<16x512xf32> to vector<16x128xf32>
    %261 = arith.negf %260 : vector<16x128xf32>
    %262 = math.exp %261 : vector<16x128xf32>
    %cst_73 = arith.constant 1.000000e+00 : f32
    %263 = vector.broadcast %cst_73 : f32 to vector<16x128xf32>
    %264 = arith.addf %263, %262 : vector<16x128xf32>
    %265 = arith.divf %263, %264 : vector<16x128xf32>
    %266 = vector.extract_strided_slice %259 {offsets = [0, 128], sizes = [16, 128], strides = [1, 1]} : vector<16x512xf32> to vector<16x128xf32>
    %267 = arith.negf %266 : vector<16x128xf32>
    %268 = math.exp %267 : vector<16x128xf32>
    %cst_74 = arith.constant 1.000000e+00 : f32
    %269 = vector.broadcast %cst_74 : f32 to vector<16x128xf32>
    %270 = arith.addf %269, %268 : vector<16x128xf32>
    %271 = arith.divf %269, %270 : vector<16x128xf32>
    %272 = vector.extract_strided_slice %259 {offsets = [0, 256], sizes = [16, 128], strides = [1, 1]} : vector<16x512xf32> to vector<16x128xf32>
    %273 = math.tanh %272 : vector<16x128xf32>
    %274 = vector.extract_strided_slice %259 {offsets = [0, 384], sizes = [16, 128], strides = [1, 1]} : vector<16x512xf32> to vector<16x128xf32>
    %275 = arith.negf %274 : vector<16x128xf32>
    %276 = math.exp %275 : vector<16x128xf32>
    %cst_75 = arith.constant 1.000000e+00 : f32
    %277 = vector.broadcast %cst_75 : f32 to vector<16x128xf32>
    %278 = arith.addf %277, %276 : vector<16x128xf32>
    %279 = arith.divf %277, %278 : vector<16x128xf32>
    %280 = arith.mulf %271, %248 : vector<16x128xf32>
    %281 = arith.mulf %265, %273 : vector<16x128xf32>
    %282 = arith.addf %280, %281 : vector<16x128xf32>
    %283 = math.tanh %282 : vector<16x128xf32>
    %284 = arith.mulf %279, %283 : vector<16x128xf32>
    %c8_i32 = arith.constant 8 : i32
    %c0_76 = arith.constant 0 : index
    %c0_77 = arith.constant 0 : index
    %285 = vector.load %arg9[%c0_76, %c0_77] : memref<16x128xf32, #tpu.memory_space<vmem>>, vector<16x128xf32>
    tpu.vector_store %arg9[%c0_76, %c0_77], %284 {strides = array<i32>} : memref<16x128xf32, #tpu.memory_space<vmem>>, vector<16x128xf32>,
    %c0_78 = arith.constant 0 : index
    %c0_79 = arith.constant 0 : index
    %286 = vector.load %arg10[%c0_78, %c0_79] : memref<16x128xf32, #tpu.memory_space<vmem>>, vector<16x128xf32>
    tpu.vector_store %arg10[%c0_78, %c0_79], %282 {strides = array<i32>} : memref<16x128xf32, #tpu.memory_space<vmem>>, vector<16x128xf32>,
    %c0_i32_80 = arith.constant 0 : i32
    %287 = arith.cmpi eq, %arg0, %c0_i32_80 : i32
    %288 = arith.extui %287 : i1 to i32
    %c0_i32_81 = arith.constant 0 : i32
    %289 = arith.cmpi ne, %288, %c0_i32_81 : i32
    scf.if %289 {
      %c0_82 = arith.constant 0 : index
      %c0_83 = arith.constant 0 : index
      %290 = vector.load %arg9[%c0_82, %c0_83] : memref<16x128xf32, #tpu.memory_space<vmem>>, vector<16x128xf32>
      %291 = arith.truncf %290 : vector<16x128xf32> to vector<16x128xbf16>
      %c0_84 = arith.constant 0 : index
      %c0_85 = arith.constant 0 : index
      %292 = vector.load %arg5[%c0_84, %c0_85] : memref<128x128xbf16, #tpu.memory_space<vmem>>, vector<128x128xbf16>
      %cst_86 = arith.constant dense<0.000000e+00> : vector<16x128xf32>
      %293 = tpu.matmul %291, %292, %cst_86 {dimension_numbers = #tpu.dot_dimension_numbers<[1], [0], [0], [1], [0, 0, 1, 1], [], []>} : vector<16x128xbf16>, vector<128x128xbf16>, vector<16x128xf32> -> vector<16x128xf32>
      %c0_87 = arith.constant 0 : index
      %c0_88 = arith.constant 0 : index
      %294 = vector.load %arg6[%c0_87, %c0_88] : memref<1x128xf32, #tpu.memory_space<vmem>>, vector<1x128xf32>
      %295 = vector.broadcast %294 : vector<1x128xf32> to vector<16x128xf32>
      %296 = arith.addf %293, %295 : vector<16x128xf32>
      %cst_89 = arith.constant dense<0xFF800000> : vector<16xf32>
      %297 = vector.multi_reduction <maximumf>, %296, %cst_89 [1] : vector<16x128xf32> to vector<16xf32>
      %298 = vector.shape_cast %297 : vector<16xf32> to vector<16x1xf32>
      %299 = vector.broadcast %298 : vector<16x1xf32> to vector<16x128xf32>
      %300 = arith.subf %296, %299 : vector<16x128xf32>
      %301 = math.exp %300 : vector<16x128xf32>
      %cst_90 = arith.constant dense<0.000000e+00> : vector<16xf32>
      %302 = vector.multi_reduction <add>, %301, %cst_90 [1] : vector<16x128xf32> to vector<16xf32>
      %303 = vector.shape_cast %302 : vector<16xf32> to vector<16x1xf32>
      %304 = vector.broadcast %303 : vector<16x1xf32> to vector<16x128xf32>
      %305 = arith.divf %301, %304 : vector<16x128xf32>
      %c0_91 = arith.constant 0 : index
      %c0_92 = arith.constant 0 : index
      %306 = vector.load %arg7[%c0_91, %c0_92] : memref<16x128xf32, #tpu.memory_space<vmem>>, vector<16x128xf32>
      tpu.vector_store %arg7[%c0_91, %c0_92], %305 {strides = array<i32>} : memref<16x128xf32, #tpu.memory_space<vmem>>, vector<16x128xf32>,
    } else {
    }
    return
  }
  func.func @transform_0(%arg0: i32) -> (i32, i32) {
    %c0_i32 = arith.constant 0 : i32
    %c0_i32_0 = arith.constant 0 : i32
    return %arg0, %c0_i32 : i32, i32
  }
  func.func @transform_1(%arg0: i32) -> (i32, i32) {
    %c0_i32 = arith.constant 0 : i32
    %c0_i32_0 = arith.constant 0 : i32
    %c0_i32_1 = arith.constant 0 : i32
    return %c0_i32, %c0_i32_0 : i32, i32
  }
  func.func @transform_2(%arg0: i32) -> (i32, i32) {
    %c0_i32 = arith.constant 0 : i32
    %c0_i32_0 = arith.constant 0 : i32
    %c0_i32_1 = arith.constant 0 : i32
    return %c0_i32, %c0_i32_0 : i32, i32
  }
  func.func @transform_3(%arg0: i32) -> (i32, i32) {
    %c0_i32 = arith.constant 0 : i32
    %c0_i32_0 = arith.constant 0 : i32
    %c0_i32_1 = arith.constant 0 : i32
    return %c0_i32, %c0_i32_0 : i32, i32
  }
  func.func @transform_4(%arg0: i32) -> (i32, i32) {
    %c0_i32 = arith.constant 0 : i32
    %c0_i32_0 = arith.constant 0 : i32
    %c0_i32_1 = arith.constant 0 : i32
    return %c0_i32, %c0_i32_0 : i32, i32
  }
  func.func @transform_5(%arg0: i32) -> (i32, i32) {
    %c0_i32 = arith.constant 0 : i32
    %c0_i32_0 = arith.constant 0 : i32
    %c0_i32_1 = arith.constant 0 : i32
    return %c0_i32, %c0_i32_0 : i32, i32
  }
  func.func @transform_6(%arg0: i32) -> (i32, i32) {
    %c0_i32 = arith.constant 0 : i32
    %c0_i32_0 = arith.constant 0 : i32
    %c0_i32_1 = arith.constant 0 : i32
    return %c0_i32, %c0_i32_0 : i32, i32
  }
}

</mosaic_0001>

<bundles_post_ra>
// kernel: sentiment_forward.1
= control target key start
LH: loop header
LB: loop body
LE: loop exit
PB: predicated region body
PF: predicated region fallthrough
CT: control target
= control target key end

     0   :  { %v3634_v1 = vmov 0   ;;  %vm158_vm0 = vcmask 261120   ;;  %v2617_v49 = vmov 0.0|0.0   ;;  %v58_v50 = vlaneseq  ;;  %s3627_s1 = inlined_call_operand.vmem [shape: bf16[32,512], index: 1, kind: input, shape index: {}]   ;;  %s3628_s0 = inlined_call_operand.vmem [shape: bf16[128,32], index: 0, kind: input, shape index: {}]   ;;  %s3629_s2 = inlined_call_operand.vmem [shape: bf16[128,512], index: 2, kind: input, shape index: {}]   ;;  %s3630_s3 = inlined_call_operand.vmem [shape: f32[1,512], index: 3, kind: input, shape index: {}]   ;;  %s3631_s4 = inlined_call_operand.vmem [shape: bf16[128,128], index: 4, kind: input, shape index: {}]   ;;  %s3632_s5 = inlined_call_operand.vmem [shape: f32[1,128], index: 5, kind: input, shape index: {}]   ;;  %s3633_s6 = inlined_call_operand.vmem [shape: f32[16,128], index: 6, kind: output, shape index: {}]  }
   0x1   :  { %v2244_v0 = vld [vmem:[%s3627_s1 + $0x4] ss:$16 sps:$4 sm:$0xff]   ;;  %215 = vmatprep.mubr.bf16.mxu0 %v3634_v1  ;;  %275 = vmatprep.mubr.bf16.mxu1 %v3634_v1  ;;  %v2246_v2 = vld [vmem:[%s3627_s1] ss:$16 sps:$4 sm:$0xff]   ;;  %v2254_v6 = vld [vmem:[%s3627_s1 + $0xc] ss:$16 sps:$4 sm:$0xff]  }
   0x2   :  { %183 = vmatprep.subr.bf16.mxu0 %v2244_v0  ;;  %2236 = vmatprep.subr.bf16.mxu1 %v2244_v0  ;;  %v2247_v3 = vld [vmem:[%s3627_s1 + $0x24] ss:$16 sps:$4 sm:$0xff]   ;;  %v2249_v4 = vld [vmem:[%s3627_s1 + $0x20] ss:$16 sps:$4 sm:$0xff]   ;;  %v2252_v8 = vld [vmem:[%s3627_s1 + $0x8] ss:$16 sps:$4 sm:$0xff]  }
   0x3   :  { %184 = vmatpush1.bf16.msra.mxu0 %v2246_v2  ;;  %2238 = vmatpush1.bf16.msra.mxu1 %v2246_v2  ;;  %v2250_v5 = vld [vmem:[%s3628_s0] sm:$0xff]   ;;  %v2678_v7 = vld [vmem:[%s3628_s0 + $0x30] sm:$0xff]   ;;  %v2259_v9 = vld [vmem:[%s3627_s1 + $0x2c] ss:$16 sps:$4 sm:$0xff]   ;;  %v59_v51 = vshrl.u32 %v58_v50, 7  ;;  %vm2619_vm1 = vmmov 0  }
   0x4   :  { %185 = vmatprep.subr.bf16.mxu0 %v2247_v3  ;;  %2237 = vmatprep.subr.bf16.mxu1 %v2247_v3  ;;  %v2257_v10 = vld [vmem:[%s3627_s1 + $0x28] ss:$16 sps:$4 sm:$0xff]   ;;  %v2696_v11 = vld [vmem:[%s3629_s2 + $0x4] ss:$16 sps:$4 sm:$0xff]   ;;  %v2705_v13 = vld [vmem:[%s3629_s2 + $0xc] ss:$16 sps:$4 sm:$0xff]  }
   0x5   :  { %v2255_v12 = vld [vmem:[%s3628_s0 + $0x8] sm:$0xff]   ;;  %v2710_v14 = vld [vmem:[%s3629_s2] ss:$16 sps:$4 sm:$0xff]   ;;  %v2716_v15 = vld [vmem:[%s3629_s2 + $0x24] ss:$16 sps:$4 sm:$0xff]   ;;  %v60_v52 = vsub.s32 0, %v59_v51 }
   0x6   :  { %v2721_v16 = vld [vmem:[%s3628_s0 + $0x38] sm:$0xff]   ;;  %v2729_v17 = vld [vmem:[%s3629_s2 + $0x20] ss:$16 sps:$4 sm:$0xff]   ;;  %v2734_v18 = vld [vmem:[%s3629_s2 + $0x44] ss:$16 sps:$4 sm:$0xff]   ;;  %v64_v54 = vsub.s32 1, %v59_v51 }
   0x7   :  { %186 = vmatpush1.bf16.msra.mxu0 %v2249_v4  ;;  %2239 = vmatpush1.bf16.msra.mxu1 %v2249_v4  ;;  %v2745_v19 = vld [vmem:[%s3629_s2 + $0x40] ss:$16 sps:$4 sm:$0xff]   ;;  %v2751_v20 = vld [vmem:[%s3629_s2 + $0x64] ss:$16 sps:$4 sm:$0xff]   ;;  %v2759_v22 = vld [vmem:[%s3629_s2 + $0x8] ss:$16 sps:$4 sm:$0xff]  }
   0x8   :  { %296 = vmatprep.subr.bf16.mxu1 %v2254_v6  ;;  %685 = vmatprep.subr.bf16.mxu0 %v2696_v11  ;;  %v2260_v21 = vld [vmem:[%s3628_s0 + $0x10] sm:$0xff]   ;;  %v2764_v23 = vld [vmem:[%s3629_s2 + $0x2c] ss:$16 sps:$4 sm:$0xff]   ;;  %v2785_v26 = vld [vmem:[%s3629_s2 + $0x28] ss:$16 sps:$4 sm:$0xff]  }
   0x9   :  { %v2771_v24 = vld [vmem:[%s3629_s2 + $0x60] ss:$16 sps:$4 sm:$0xff]   ;;  %v2778_v25 = vld [vmem:[%s3629_s2 + $0x84] ss:$16 sps:$4 sm:$0xff]   ;;  %v2792_v27 = vld [vmem:[%s3629_s2 + $0x4c] ss:$16 sps:$4 sm:$0xff]  }
   0xa   :  { %2102 = vmatmul.mubr.msk.bf16.vlgmr.msra.gmra.mrb[0].mxu0 %vm158_vm0, %v2250_v5  ;;  %2108 = vmatmul.mubr.msk.bf16.vlgmr.msra.gmra.mrb[0].mxu1 %vm158_vm0, %v2678_v7  ;;  %v2798_v28 = vld [vmem:[%s3629_s2 + $0x80] ss:$16 sps:$4 sm:$0xff]   ;;  %v2270_v29 = vld [vmem:[%s3628_s0 + $0x18] sm:$0xff]   ;;  %v2813_v31 = vld [vmem:[%s3629_s2 + $0xa4] ss:$16 sps:$4 sm:$0xff]  }
   0xb   :  { %297 = vmatpush1.bf16.msra.mxu1 %v2252_v8  ;;  %225 = vmatprep.mubr.bf16.mxu0 %v3634_v1  ;;  %v2808_v30 = vld [vmem:[%s3629_s2 + $0x48] ss:$16 sps:$4 sm:$0xff]   ;;  %v2819_v32 = vld [vmem:[%s3629_s2 + $0xa0] ss:$16 sps:$4 sm:$0xff]   ;;  %v2825_v33 = vld [vmem:[%s3629_s2 + $0x6c] ss:$16 sps:$4 sm:$0xff]  }
   0xc   :  { %285 = vmatprep.mubr.bf16.mxu1 %v3634_v1  ;;  %298 = vmatprep.subr.bf16.mxu1 %v2259_v9  ;;  %v2832_v34 = vld [vmem:[%s3629_s2 + $0xc4] ss:$16 sps:$4 sm:$0xff]   ;;  %v2841_v35 = vld [vmem:[%s3629_s2 + $0x68] ss:$16 sps:$4 sm:$0xff]   ;;  %v2848_v36 = vld [vmem:[%s3629_s2 + $0xc0] ss:$16 sps:$4 sm:$0xff]  }
   0xd   :  { %686 = vmatpush1.bf16.msra.mxu0 %v2710_v14  ;;  %v2853_v37 = vld [vmem:[%s3629_s2 + $0x8c] ss:$16 sps:$4 sm:$0xff]   ;;  %v2280_v38 = vld [vmem:[%s3628_s0 + $0x20] sm:$0xff]   ;;  %v2868_v40 = vld [vmem:[%s3629_s2 + $0x88] ss:$16 sps:$4 sm:$0xff]  }
   0xe   :  { %687 = vmatprep.subr.bf16.mxu0 %v2716_v15  ;;  %v2863_v39 = vld [vmem:[%s3629_s2 + $0xe4] ss:$16 sps:$4 sm:$0xff]   ;;  %v2874_v41 = vld [vmem:[%s3629_s2 + $0xe0] ss:$16 sps:$4 sm:$0xff]   ;;  %v2880_v42 = vld [vmem:[%s3629_s2 + $0xac] ss:$16 sps:$4 sm:$0xff]  }
   0xf   :  { %299 = vmatpush1.bf16.msra.mxu1 %v2257_v10  ;;  %v2891_v43 = vld [vmem:[%s3629_s2 + $0xa8] ss:$16 sps:$4 sm:$0xff]   ;;  %v2898_v44 = vld [vmem:[%s3629_s2 + $0xcc] ss:$16 sps:$4 sm:$0xff]   ;;  %v56_v53 = vld [vmem:[%s3630_s3] sm:$0xf] }
  0x10   :  { %728 = vmatprep.subr.bf16.mxu1 %v2705_v13  ;;  %v2290_v45 = vld [vmem:[%s3628_s0 + $0x28] sm:$0xff]   ;;  %v2976_v55 = vrot.slane %v56_v53, %v60_v52  ;;  %v2978_v56 = vrot.slane %v56_v53, %v64_v54 }
  0x11   :  { %688 = vmatpush1.bf16.msra.mxu0 %v2729_v17  ;;  %v2908_v46 = vld [vmem:[%s3629_s2 + $0xc8] ss:$16 sps:$4 sm:$0xff]   ;;  %v2914_v47 = vld [vmem:[%s3629_s2 + $0xec] ss:$16 sps:$4 sm:$0xff]  }
  0x12   :  { %2103 = vmatmul.mubr.msk.bf16.gmra.mrb[4].mxu0 %vm158_vm0, %v2255_v12  ;;  %2109 = vmatmul.mubr.msk.bf16.gmra.mrb[4].mxu1 %vm158_vm0, %v2721_v16  ;;  %v2924_v48 = vld [vmem:[%s3629_s2 + $0xe8] ss:$16 sps:$4 sm:$0xff]  }
  0x13   :  { %235 = vmatprep.mubr.bf16.mxu0 %v3634_v1  ;;  %328 = vmatprep.mubr.bf16.mxu1 %v3634_v1 }
  0x14   :  { %689 = vmatprep.subr.bf16.mxu0 %v2734_v18 }
  0x15   :  { %690 = vmatpush1.bf16.msra.mxu0 %v2745_v19 }
  0x16   :  { %691 = vmatprep.subr.bf16.mxu0 %v2751_v20 }
  0x19   :  { %692 = vmatpush1.bf16.msra.mxu0 %v2771_v24 }
  0x1a   :  { %2104 = vmatmul.mubr.msk.bf16.gmra.mrb[8].mxu0 %vm158_vm0, %v2260_v21  ;;  %2110 = vmatmul.mubr.msk.bf16.vlgmr.msra.gmra.mrb[8].mxu1 %vm158_vm0, %v2250_v5 }
  0x1b   :  { %729 = vmatpush1.bf16.msra.mxu1 %v2759_v22  ;;  %245 = vmatprep.mubr.bf16.mxu0 %v3634_v1 }
  0x1c   :  { %338 = vmatprep.mubr.bf16.mxu1 %v3634_v1  ;;  %730 = vmatprep.subr.bf16.mxu1 %v2764_v23 }
  0x1d   :  { %693 = vmatprep.subr.bf16.mxu0 %v2778_v25 }
  0x1e   :  { %694 = vmatpush1.bf16.msra.mxu0 %v2798_v28 }
  0x1f   :  { %731 = vmatpush1.bf16.msra.mxu1 %v2785_v26  ;;  %695 = vmatprep.subr.bf16.mxu0 %v2813_v31 }
  0x20   :  { %732 = vmatprep.subr.bf16.mxu1 %v2792_v27 }
  0x22   :  { %2105 = vmatmul.mubr.msk.bf16.gmra.mrb[12].mxu0 %vm158_vm0, %v2270_v29  ;;  %2111 = vmatmul.mubr.msk.bf16.gmra.mrb[12].mxu1 %vm158_vm0, %v2255_v12 }
  0x23   :  { %255 = vmatprep.mubr.bf16.mxu0 %v3634_v1  ;;  %348 = vmatprep.mubr.bf16.mxu1 %v3634_v1 }
  0x24   :  { %733 = vmatpush1.bf16.msra.mxu1 %v2808_v30  ;;  %696 = vmatpush1.bf16.msra.mxu0 %v2819_v32 }
  0x25   :  { %734 = vmatprep.subr.bf16.mxu1 %v2825_v33  ;;  %697 = vmatprep.subr.bf16.mxu0 %v2832_v34 }
  0x28   :  { %735 = vmatpush1.bf16.msra.mxu1 %v2841_v35  ;;  %698 = vmatpush1.bf16.msra.mxu0 %v2848_v36 }
  0x29   :  { %736 = vmatprep.subr.bf16.mxu1 %v2853_v37  ;;  %699 = vmatprep.subr.bf16.mxu0 %v2863_v39 }
  0x2a   :  { %2106 = vmatmul.mubr.msk.bf16.gmra.mrb[16].mxu0 %vm158_vm0, %v2280_v38  ;;  %2112 = vmatmul.mubr.msk.bf16.gmra.mrb[16].mxu1 %vm158_vm0, %v2260_v21 }
  0x2b   :  { %265 = vmatprep.mubr.bf16.mxu0 %v3634_v1  ;;  %358 = vmatprep.mubr.bf16.mxu1 %v3634_v1 }
  0x2c   :  { %737 = vmatpush1.bf16.msra.mxu1 %v2868_v40  ;;  %700 = vmatpush1.bf16.msra.mxu0 %v2874_v41 }
  0x2d   :  { %738 = vmatprep.subr.bf16.mxu1 %v2880_v42  ;;  %843 = vmatprep.subr.bf16.mxu0 %v2696_v11 }
  0x30   :  { %739 = vmatpush1.bf16.msra.mxu1 %v2891_v43 }
  0x31   :  { %740 = vmatprep.subr.bf16.mxu1 %v2898_v44 }
  0x32   :  { %2107 = vmatmul.mubr.msk.bf16.gmra.mrb[20].mxu0 %vm158_vm0, %v2290_v45  ;;  %2113 = vmatmul.mubr.msk.bf16.gmra.mrb[20].mxu1 %vm158_vm0, %v2270_v29 }
  0x33   :  { %368 = vmatprep.mubr.bf16.mxu1 %v3634_v1  ;;  %717 = vmatprep.mubr.bf16.mxu0 %v3634_v1 }
  0x34   :  { %741 = vmatpush1.bf16.msra.mxu1 %v2908_v46 }
  0x35   :  { %742 = vmatprep.subr.bf16.mxu1 %v2914_v47 }
  0x38   :  { %743 = vmatpush1.bf16.msra.mxu1 %v2924_v48 }
  0x39   :  { %886 = vmatprep.subr.bf16.mxu1 %v2705_v13 }
  0x3a   :  { %2114 = vmatmul.mubr.msk.bf16.gmra.mrb[24].mxu1 %vm158_vm0, %v2280_v38  ;;  %718 = vmatmul.mubr.bf16.vlgmr.msra.gmra.mrb[24].mxu0 %v2617_v49 }
  0x3b   :  { %378 = vmatprep.mubr.bf16.mxu1 %v3634_v1  ;;  %844 = vmatpush1.bf16.msra.mxu0 %v2710_v14 }
  0x3c   :  { %845 = vmatprep.subr.bf16.mxu0 %v2716_v15  ;;  %875 = vmatprep.mubr.bf16.mxu0 %v3634_v1 }
  0x3f   :  { %846 = vmatpush1.bf16.msra.mxu0 %v2729_v17 }
  0x40   :  { %847 = vmatprep.subr.bf16.mxu0 %v2734_v18 }
  0x42   :  { %2115 = vmatmul.mubr.msk.bf16.gmra.mrb[28].mxu1 %vm158_vm0, %v2290_v45 }
  0x43   :  { %388 = vmatprep.mubr.bf16.mxu1 %v3634_v1  ;;  %848 = vmatpush1.bf16.msra.mxu0 %v2745_v19 }
  0x44   :  { %849 = vmatprep.subr.bf16.mxu0 %v2751_v20 }
  0x47   :  { %850 = vmatpush1.bf16.msra.mxu0 %v2771_v24 }
  0x48   :  { %851 = vmatprep.subr.bf16.mxu0 %v2778_v25 }
  0x4a   :  { %2116 = vmatmul.mubr.msk.bf16.gmra.mrb[32].mxu1 %vm158_vm0, %v2678_v7 }
  0x4b   :  { %398 = vmatprep.mubr.bf16.mxu1 %v3634_v1  ;;  %852 = vmatpush1.bf16.msra.mxu0 %v2798_v28 }
  0x4c   :  { %853 = vmatprep.subr.bf16.mxu0 %v2813_v31 }
  0x4f   :  { %854 = vmatpush1.bf16.msra.mxu0 %v2819_v32 }
  0x50   :  { %855 = vmatprep.subr.bf16.mxu0 %v2832_v34 }
  0x52   :  { %2117 = vmatmul.mubr.msk.bf16.gmra.mrb[36].mxu1 %vm158_vm0, %v2721_v16 }
  0x53   :  { %760 = vmatprep.mubr.bf16.mxu1 %v3634_v1  ;;  %856 = vmatpush1.bf16.msra.mxu0 %v2848_v36 }
  0x54   :  { %857 = vmatprep.subr.bf16.mxu0 %v2863_v39 }
  0x57   :  { %858 = vmatpush1.bf16.msra.mxu0 %v2874_v41 }
  0x58   :  { %1001 = vmatprep.subr.bf16.mxu0 %v2696_v11 }
  0x5a   :  { %761 = vmatmul.mubr.bf16.vlgmr.msra.gmra.mrb[40].mxu1 %v2617_v49 }
  0x5b   :  { %887 = vmatpush1.bf16.msra.mxu1 %v2759_v22  ;;  %918 = vmatprep.mubr.bf16.mxu1 %v3634_v1 }
  0x5c   :  { %888 = vmatprep.subr.bf16.mxu1 %v2764_v23 }
  0x5f   :  { %889 = vmatpush1.bf16.msra.mxu1 %v2785_v26 }
  0x60   :  { %890 = vmatprep.subr.bf16.mxu1 %v2792_v27 }
  0x63   :  { %891 = vmatpush1.bf16.msra.mxu1 %v2808_v30 }
  0x64   :  { %892 = vmatprep.subr.bf16.mxu1 %v2825_v33 }
  0x67   :  { %893 = vmatpush1.bf16.msra.mxu1 %v2841_v35 }
  0x68   :  { %894 = vmatprep.subr.bf16.mxu1 %v2853_v37 }
  0x6b   :  { %895 = vmatpush1.bf16.msra.mxu1 %v2868_v40 }
  0x6c   :  { %896 = vmatprep.subr.bf16.mxu1 %v2880_v42 }
  0x6f   :  { %897 = vmatpush1.bf16.msra.mxu1 %v2891_v43 }
  0x70   :  { %898 = vmatprep.subr.bf16.mxu1 %v2898_v44 }
  0x73   :  { %899 = vmatpush1.bf16.msra.mxu1 %v2908_v46 }
  0x74   :  { %900 = vmatprep.subr.bf16.mxu1 %v2914_v47 }
  0x77   :  { %901 = vmatpush1.bf16.msra.mxu1 %v2924_v48 }
  0x78   :  { %1044 = vmatprep.subr.bf16.mxu1 %v2705_v13 }
  0xdd   :  { %v277_v57 = vpop.f32.mrb[0].mxu1  ;;  %v217_v58 = vpop.f32.mrb[0].mxu0 }
  0xde   :  { %v278_v59 = vadd.f32 %v277_v57, %v2976_v55  ;;  %v279_v60 = vpop.f32.mrb[1].mxu1  ;;  %v218_v61 = vadd.f32 %v217_v58, %v2976_v55  ;;  %v219_v62 = vpop.f32.mrb[1].mxu0 }
  0xdf   :  { %v280_v63 = vadd.f32 %v279_v60, %v2978_v56  ;;  %v281_v0 = vpop.f32.mrb[2].mxu1  ;;  %v220_v2 = vadd.f32 %v219_v62, %v2978_v56  ;;  %v221_v3 = vpop.f32.mrb[2].mxu0  ;;  %v68_v62 = vsub.s32 2, %v59_v51 }
  0xe0   :  { %v282_v4 = vadd.f32 %v281_v0, %v2976_v55  ;;  %v283_v5 = vpop.f32.mrb[3].mxu1  ;;  %v222_v6 = vadd.f32 %v221_v3, %v2976_v55  ;;  %v223_v7 = vpop.f32.mrb[3].mxu0  ;;  %v72_v3 = vsub.s32 3, %v59_v51 }
  0xe1   :  { %v284_v8 = vadd.f32 %v283_v5, %v2978_v56  ;;  %v224_v9 = vadd.f32 %v223_v7, %v2978_v56 }
  0xe2   :  { %v2988_v10 = vpack.c.bf16 %v282_v4, %v278_v59  ;;  %v2990_v12 = vpack.c.bf16 %v222_v6, %v218_v61 }
  0xe3   :  { %v2992_v16 = vpack.c.bf16 %v284_v8, %v280_v63  ;;  %v2994_v21 = vpack.c.bf16 %v224_v9, %v220_v2  ;;  %v3012_v9 = vrot.slane %v56_v53, %v68_v62 }
  0xe4   :  { %3656 = vst [vmem:[#allocation5_spill] sm:$0xff] %v2988_v10 }
  0xe5   :  { %3657 = vst [vmem:[#allocation6_spill] sm:$0xff] %v2992_v16  ;;  %v287_v29 = vpop.f32.mrb[4].mxu1  ;;  %v227_v38 = vpop.f32.mrb[4].mxu0 }
  0xe6   :  { %v288_v45 = vadd.f32 %v287_v29, %v2976_v55  ;;  %v289_v49 = vpop.f32.mrb[5].mxu1  ;;  %v228_v50 = vadd.f32 %v227_v38, %v2976_v55  ;;  %v229_v52 = vpop.f32.mrb[5].mxu0  ;;  %v3014_v38 = vrot.slane %v56_v53, %v72_v3 }
  0xe7   :  { %v290_v54 = vadd.f32 %v289_v49, %v2978_v56  ;;  %v291_v57 = vpop.f32.mrb[6].mxu1  ;;  %v230_v58 = vadd.f32 %v229_v52, %v2978_v56  ;;  %v231_v59 = vpop.f32.mrb[6].mxu0 }
  0xe8   :  { %v292_v60 = vadd.f32 %v291_v57, %v2976_v55  ;;  %v293_v61 = vpop.f32.mrb[7].mxu1  ;;  %v232_v63 = vadd.f32 %v231_v59, %v2976_v55  ;;  %v233_v0 = vpop.f32.mrb[7].mxu0 }
  0xe9   :  { %v294_v2 = vadd.f32 %v293_v61, %v2978_v56  ;;  %v234_v4 = vadd.f32 %v233_v0, %v2978_v56 }
  0xea   :  { %v3004_v5 = vpack.c.bf16 %v292_v60, %v288_v45  ;;  %v3006_v6 = vpack.c.bf16 %v232_v63, %v228_v50 }
  0xeb   :  { %v3008_v7 = vpack.c.bf16 %v294_v2, %v290_v54  ;;  %v3010_v8 = vpack.c.bf16 %v234_v4, %v230_v58 }
  0xec   :  { %3658 = vst [vmem:[#allocation7_spill] sm:$0xff] %v3004_v5 }
  0xed   :  { %3659 = vst [vmem:[#allocation8_spill] sm:$0xff] %v3008_v7  ;;  %v330_v29 = vpop.f32.mrb[8].mxu1  ;;  %v237_v49 = vpop.f32.mrb[8].mxu0 }
  0xee   :  { %v332_v52 = vpop.f32.mrb[9].mxu1  ;;  %v238_v57 = vadd.f32 %v237_v49, %v2976_v55  ;;  %v239_v51 = vpop.f32.mrb[9].mxu0  ;;  %v331_v50 = vadd.f32 %v330_v29, %v3012_v9 }
  0xef   :  { %v334_v59 = vpop.f32.mrb[10].mxu1  ;;  %v240_v45 = vadd.f32 %v239_v51, %v2978_v56  ;;  %v241_v60 = vpop.f32.mrb[10].mxu0  ;;  %v333_v53 = vadd.f32 %v332_v52, %v3014_v38 }
  0xf0   :  { %v335_v54 = vadd.f32 %v334_v59, %v3012_v9  ;;  %v336_v58 = vpop.f32.mrb[11].mxu1  ;;  %v242_v61 = vadd.f32 %v241_v60, %v2976_v55  ;;  %v243_v62 = vpop.f32.mrb[11].mxu0 }
  0xf1   :  { %v337_v63 = vadd.f32 %v336_v58, %v3014_v38  ;;  %v244_v0 = vadd.f32 %v243_v62, %v2978_v56 }
  0xf2   :  { %v3024_v2 = vpack.c.bf16 %v335_v54, %v331_v50  ;;  %v3026_v3 = vpack.c.bf16 %v242_v61, %v238_v57 }
  0xf3   :  { %v3028_v4 = vpack.c.bf16 %v337_v63, %v333_v53  ;;  %v3030_v49 = vpack.c.bf16 %v244_v0, %v240_v45 }
  0xf4   :  { %3660 = vst [vmem:[#allocation9_spill] sm:$0xff] %v3026_v3 }
  0xf5   :  { %3661 = vst [vmem:[#allocation10_spill] sm:$0xff] %v3030_v49  ;;  %v340_v29 = vpop.f32.mrb[12].mxu1  ;;  %v247_v51 = vpop.f32.mrb[12].mxu0 }
  0xf6   :  { %v341_v59 = vadd.f32 %v340_v29, %v3012_v9  ;;  %v342_v60 = vpop.f32.mrb[13].mxu1  ;;  %v248_v1 = vadd.f32 %v247_v51, %v2976_v55  ;;  %v249_v52 = vpop.f32.mrb[13].mxu0 }
  0xf7   :  { %v343_v58 = vadd.f32 %v342_v60, %v3014_v38  ;;  %v344_v7 = vpop.f32.mrb[14].mxu1  ;;  %v250_v50 = vadd.f32 %v249_v52, %v2978_v56  ;;  %v251_v54 = vpop.f32.mrb[14].mxu0 }
  0xf8   :  { %v345_v57 = vadd.f32 %v344_v7, %v3012_v9  ;;  %v346_v61 = vpop.f32.mrb[15].mxu1  ;;  %v252_v45 = vadd.f32 %v251_v54, %v2976_v55  ;;  %v253_v62 = vpop.f32.mrb[15].mxu0 }
  0xf9   :  { %v347_v53 = vadd.f32 %v346_v61, %v3014_v38  ;;  %v254_v63 = vadd.f32 %v253_v62, %v2978_v56 }
  0xfa   :  { %v3040_v0 = vpack.c.bf16 %v345_v57, %v341_v59  ;;  %v3042_v29 = vpack.c.bf16 %v252_v45, %v248_v1 }
  0xfb   :  { %v3044_v51 = vpack.c.bf16 %v347_v53, %v343_v58  ;;  %v3046_v60 = vpack.c.bf16 %v254_v63, %v250_v50 }
  0xfc   :  { %3662 = vst [vmem:[#allocation11_spill] sm:$0xff] %v3042_v29 }
  0xfd   :  { %3663 = vst [vmem:[#allocation12_spill] sm:$0xff] %v3044_v51  ;;  %3664 = vst [vmem:[#allocation13_spill] sm:$0xff] %v3046_v60  ;;  %v350_v52 = vpop.f32.mrb[16].mxu1  ;;  %v257_v5 = vpop.f32.mrb[16].mxu0 }
  0xfe   :  { %v351_v7 = vadd.f32 %v350_v52, %v3012_v9  ;;  %v352_v16 = vpop.f32.mrb[17].mxu1  ;;  %v258_v54 = vadd.f32 %v257_v5, %v2976_v55  ;;  %v259_v10 = vpop.f32.mrb[17].mxu0 }
  0xff   :  { %v353_v61 = vadd.f32 %v352_v16, %v3014_v38  ;;  %v354_v49 = vpop.f32.mrb[18].mxu1  ;;  %v260_v59 = vadd.f32 %v259_v10, %v2978_v56  ;;  %v261_v57 = vpop.f32.mrb[18].mxu0 }
 0x100   :  { %v355_v1 = vadd.f32 %v354_v49, %v3012_v9  ;;  %v356_v58 = vpop.f32.mrb[19].mxu1  ;;  %v262_v50 = vadd.f32 %v261_v57, %v2976_v55  ;;  %v263_v45 = vpop.f32.mrb[19].mxu0 }
 0x101   :  { %v357_v62 = vadd.f32 %v356_v58, %v3014_v38  ;;  %v264_v53 = vadd.f32 %v263_v45, %v2978_v56 }
 0x102   :  { %v3056_v63 = vpack.c.bf16 %v355_v1, %v351_v7  ;;  %v3058_v5 = vpack.c.bf16 %v262_v50, %v258_v54 }
 0x103   :  { %v3060_v52 = vpack.c.bf16 %v357_v62, %v353_v61  ;;  %v3062_v16 = vpack.c.bf16 %v264_v53, %v260_v59 }
 0x104   :  { %3665 = vst [vmem:[#allocation14_spill] sm:$0xff] %v3058_v5  ;;  %v485_v5 = vunpack.c.l.bf16 %v2994_v21 }
 0x105   :  { %3666 = vst [vmem:[#allocation15_spill] sm:$0xff] %v3060_v52  ;;  %3667 = vst [vmem:[#allocation16_spill] sm:$0xff] %v3062_v16  ;;  %v360_v10 = vpop.f32.mrb[20].mxu1  ;;  %v267_v60 = vpop.f32.mrb[20].mxu0 }
 0x106   :  { %v361_v49 = vadd.f32 %v360_v10, %v3012_v9  ;;  %v362_v29 = vpop.f32.mrb[21].mxu1  ;;  %v268_v57 = vadd.f32 %v267_v60, %v2976_v55  ;;  %v269_v3 = vpop.f32.mrb[21].mxu0 }
 0x107   :  { %v363_v58 = vadd.f32 %v362_v29, %v3014_v38  ;;  %v364_v51 = vpop.f32.mrb[22].mxu1  ;;  %v270_v7 = vadd.f32 %v269_v3, %v2978_v56  ;;  %v271_v1 = vpop.f32.mrb[22].mxu0  ;;  %v484_v3 = vunpack.c.l.bf16 %v2990_v12 }
 0x108   :  { %v365_v54 = vadd.f32 %v364_v51, %v3012_v9  ;;  %v366_v61 = vpop.f32.mrb[23].mxu1  ;;  %v272_v59 = vadd.f32 %v271_v1, %v2976_v55  ;;  %v273_v50 = vpop.f32.mrb[23].mxu0 }
 0x109   :  { %v367_v45 = vadd.f32 %v366_v61, %v3014_v38  ;;  %v274_v62 = vadd.f32 %v273_v50, %v2978_v56  ;;  %v488_v56 = vunpack.c.h.bf16 %v2990_v12 }
 0x10a   :  { %v3072_v53 = vpack.c.bf16 %v365_v54, %v361_v49  ;;  %v3074_v60 = vpack.c.bf16 %v272_v59, %v268_v57 }
 0x10b   :  { %v3076_v10 = vpack.c.bf16 %v367_v45, %v363_v58  ;;  %v3078_v29 = vpack.c.bf16 %v274_v62, %v270_v7  ;;  %v489_v7 = vunpack.c.h.bf16 %v2994_v21 }
 0x10c   :  { %3668 = vst [vmem:[#allocation17_spill] sm:$0xff] %v3074_v60 }
 0x10d   :  { %3669 = vst [vmem:[#allocation18_spill] sm:$0xff] %v3076_v10  ;;  %3670 = vst [vmem:[#allocation19_spill] sm:$0xff] %v3078_v29  ;;  %v370_v16 = vpop.f32.mrb[24].mxu1  ;;  %v719_v51 = vpop.f32.mrb[24].mxu0 }
 0x10e   :  { %v371_v55 = vadd.f32 %v370_v16, %v3012_v9  ;;  %v771_v1 = vadd.f32 %v719_v51, %v484_v3  ;;  %v372_v61 = vpop.f32.mrb[25].mxu1  ;;  %v721_v52 = vpop.f32.mrb[25].mxu0 }
 0x10f   :  { %v373_v49 = vadd.f32 %v372_v61, %v3014_v38  ;;  %v772_v57 = vadd.f32 %v721_v52, %v485_v5  ;;  %v374_v58 = vpop.f32.mrb[26].mxu1  ;;  %v723_v54 = vpop.f32.mrb[26].mxu0 }
 0x110   :  { %v375_v59 = vadd.f32 %v374_v58, %v3012_v9  ;;  %v775_v50 = vadd.f32 %v723_v54, %v488_v56  ;;  %v376_v45 = vpop.f32.mrb[27].mxu1  ;;  %v725_v62 = vpop.f32.mrb[27].mxu0  ;;  %v2150_v21 = vmul.f32 -1.442695, %v771_v1 }
 0x111   :  { %v377_v29 = vadd.f32 %v376_v45, %v3014_v38  ;;  %v776_v16 = vadd.f32 %v725_v62, %v489_v7  ;;  %v2152_v54 = vmul.f32 -1.442695, %v772_v57 }
 0x112   :  { %v3088_v3 = vpack.c.bf16 %v375_v59, %v371_v55  ;;  %2320 = vpow2.f32 %v2150_v21 }
 0x113   :  { %v3090_v51 = vpack.c.bf16 %v377_v29, %v373_v49  ;;  %v2153_v45 = vmul.f32 -1.442695, %v776_v16  ;;  %v2151_v29 = vmul.f32 -1.442695, %v775_v50  ;;  %2322 = vpow2.f32 %v2152_v54 }
 0x115   :  { %v380_v12 = vpop.f32.mrb[28].mxu1  ;;  %2324 = vpow2.f32 %v2153_v45 }
 0x116   :  { %v381_v61 = vadd.f32 %v380_v12, %v3012_v9  ;;  %v382_v5 = vpop.f32.mrb[29].mxu1  ;;  %2326 = vpow2.f32 %v2151_v29 }
 0x117   :  { %v383_v52 = vadd.f32 %v382_v5, %v3014_v38  ;;  %v384_v60 = vpop.f32.mrb[30].mxu1 }
 0x118   :  { %v385_v58 = vadd.f32 %v384_v60, %v3012_v9  ;;  %v386_v56 = vpop.f32.mrb[31].mxu1 }
 0x119   :  { %v387_v10 = vadd.f32 %v386_v56, %v3014_v38 }
 0x11a   :  { %v3096_v7 = vpack.c.bf16 %v385_v58, %v381_v61 }
 0x11b   :  { %v3098_v55 = vpack.c.bf16 %v387_v10, %v383_v52 }
 0x11c   :  { %v2321_v5 = vpop.eup %2320 }
 0x11d   :  { %3671 = vst [vmem:[#allocation20_spill] sm:$0xff] %v3098_v55  ;;  %v390_v49 = vpop.f32.mrb[32].mxu1  ;;  %v2323_v58 = vpop.eup %2322 }
 0x11e   :  { %v391_v59 = vadd.f32 %v390_v49, %v3012_v9  ;;  %v392_v62 = vpop.f32.mrb[33].mxu1 }
 0x11f   :  { %v393_v1 = vadd.f32 %v392_v62, %v3014_v38  ;;  %v394_v60 = vpop.f32.mrb[34].mxu1  ;;  %v2325_v45 = vpop.eup %2324  ;;  %v785_v62 = vadd.f32 1.0, %v2321_v5  ;;  %v490_v5 = vunpack.c.h.bf16 %v3024_v2 }
 0x120   :  { %v395_v57 = vadd.f32 %v394_v60, %v3012_v9  ;;  %v396_v12 = vpop.f32.mrb[35].mxu1 }
 0x121   :  { %v397_v16 = vadd.f32 %v396_v12, %v3014_v38  ;;  %v798_v12 = vadd.f32 1.0, %v2325_v45  ;;  %2328 = vrcp.f32 %v785_v62 }
 0x122   :  { %v3104_v61 = vpack.c.bf16 %v395_v57, %v391_v59  ;;  %v2327_v59 = vpop.eup %2326  ;;  %v797_v57 = vadd.f32 1.0, %v2323_v58 }
 0x123   :  { %v3106_v10 = vpack.c.bf16 %v397_v16, %v393_v1 }
 0x124   :  { %3672 = vst [vmem:[#allocation21_spill] sm:$0xff] %v3104_v61  ;;  %v487_v61 = vunpack.c.l.bf16 %v3028_v4  ;;  %2330 = vrcp.f32 %v797_v57 }
 0x125   :  { %3673 = vst [vmem:[#allocation22_spill] sm:$0xff] %v3106_v10  ;;  %v400_v50 = vpop.f32.mrb[36].mxu1  ;;  %v786_v10 = vadd.f32 1.0, %v2327_v59  ;;  %2332 = vrcp.f32 %v798_v12 }
 0x126   :  { %v401_v52 = vadd.f32 %v400_v50, %v3012_v9  ;;  %v402_v21 = vpop.f32.mrb[37].mxu1  ;;  %v486_v50 = vunpack.c.l.bf16 %v3024_v2 }
 0x127   :  { %v403_v56 = vadd.f32 %v402_v21, %v3014_v38  ;;  %v404_v54 = vpop.f32.mrb[38].mxu1 }
 0x128   :  { %v405_v29 = vadd.f32 %v404_v54, %v3012_v9  ;;  %v406_v49 = vpop.f32.mrb[39].mxu1 }
 0x129   :  { %v407_v60 = vadd.f32 %v406_v49, %v3014_v38 }
 0x12a   :  { %v3112_v1 = vpack.c.bf16 %v405_v29, %v401_v52  ;;  %v491_v52 = vunpack.c.h.bf16 %v3028_v4 }
 0x12b   :  { %v3114_v16 = vpack.c.bf16 %v407_v60, %v403_v56  ;;  %v2329_v60 = vpop.eup %2328 }
 0x12c   :  { %3674 = vst [vmem:[#allocation23_spill] sm:$0xff] %v3112_v1 }
 0x12d   :  { %3675 = vst [vmem:[#allocation24_spill] sm:$0xff] %v3114_v16  ;;  %v762_v21 = vpop.f32.mrb[40].mxu1 }
 0x12e   :  { %v773_v9 = vadd.f32 %v762_v21, %v486_v50  ;;  %v764_v54 = vpop.f32.mrb[41].mxu1  ;;  %v2331_v59 = vpop.eup %2330 }
 0x12f   :  { %v774_v38 = vadd.f32 %v764_v54, %v487_v61  ;;  %v766_v58 = vpop.f32.mrb[42].mxu1  ;;  %v2333_v57 = vpop.eup %2332  ;;  %v817_v12 = vmul.f32 0.0, %v2331_v59 }
 0x130   :  { %2334 = vtanh.f32 %v773_v9  ;;  %v777_v56 = vadd.f32 %v766_v58, %v490_v5  ;;  %v768_v45 = vpop.f32.mrb[43].mxu1  ;;  %v818_v4 = vmul.f32 0.0, %v2333_v57  ;;  %v3676_v57 = vmov 0  }
 0x131   :  { %2336 = vrcp.f32 %v786_v10  ;;  %v2154_v29 = vmul.f32 -1.442695, %v774_v38  ;;  %v778_v49 = vadd.f32 %v768_v45, %v491_v52 }
 0x132   :  { %2338 = vtanh.f32 %v777_v56 }
 0x133   :  { %2340 = vpow2.f32 %v2154_v29  ;;  %v2155_v62 = vmul.f32 -1.442695, %v778_v49 }
 0x135   :  { %2342 = vpow2.f32 %v2155_v62 }
 0x13a   :  { %v2335_v50 = vpop.eup %2334 }
 0x13b   :  { %v2337_v2 = vpop.eup %2336  ;;  %v819_v61 = vmul.f32 %v2335_v50, %v2329_v60 }
 0x13c   :  { %v2339_v21 = vpop.eup %2338 }
 0x13d   :  { %v2341_v54 = vpop.eup %2340  ;;  %v3120_v9 = vadd.f32 %v819_v61, %v817_v12  ;;  %v820_v5 = vmul.f32 %v2339_v21, %v2337_v2 }
 0x13e   :  { %v811_v10 = vadd.f32 1.0, %v2341_v54  ;;  %v838_v54 = vunpack.c.h.bf16 %v3006_v6 }
 0x13f   :  { %v2343_v38 = vpop.eup %2342  ;;  %2344 = vtanh.f32 %v3120_v9  ;;  %v3123_v58 = vadd.f32 %v820_v5, %v818_v4 }
 0x140   :  { %2346 = vrcp.f32 %v811_v10  ;;  %v812_v52 = vadd.f32 1.0, %v2343_v38  ;;  %v839_v38 = vunpack.c.h.bf16 %v3010_v8 }
 0x141   :  { %2348 = vtanh.f32 %v3123_v58 }
 0x142   :  { %2350 = vrcp.f32 %v812_v52 }
 0x149   :  { %v2345_v56 = vpop.eup %2344 }
 0x14a   :  { %v2347_v45 = vpop.eup %2346 }
 0x14b   :  { %v2349_v29 = vpop.eup %2348  ;;  %v825_v62 = vmul.f32 %v2347_v45, %v2345_v56 }
 0x14c   :  { %v2351_v49 = vpop.eup %2350 }
 0x14d   :  { %v826_v60 = vmul.f32 %v2351_v49, %v2349_v29 }
 0x14f   :  { %v842_v59 = vpack.c.bf16 %v826_v60, %v825_v62 }
 0x151   :  { %876 = vmatmul.mubr.bf16.vlgmr.msra.gmra.mrb[28].mxu0 %v842_v59  ;;  %919 = vmatmul.mubr.bf16.vlgmr.msra.gmra.mrb[44].mxu1 %v842_v59 }
 0x152   :  { %1002 = vmatpush1.bf16.msra.mxu0 %v2710_v14  ;;  %1045 = vmatpush1.bf16.msra.mxu1 %v2759_v22  ;;  %v834_v14 = vunpack.c.l.bf16 %v3006_v6 }
 0x153   :  { %1003 = vmatprep.subr.bf16.mxu0 %v2716_v15  ;;  %1046 = vmatprep.subr.bf16.mxu1 %v2764_v23  ;;  %v836_v15 = vunpack.c.l.bf16 %v3040_v0 }
 0x154   :  { %1033 = vmatprep.mubr.bf16.mxu0 %v3676_v57  ;;  %1076 = vmatprep.mubr.bf16.mxu1 %v3676_v57 }
 0x156   :  { %1004 = vmatpush1.bf16.msra.mxu0 %v2729_v17  ;;  %1047 = vmatpush1.bf16.msra.mxu1 %v2785_v26 }
 0x157   :  { %1005 = vmatprep.subr.bf16.mxu0 %v2734_v18  ;;  %1048 = vmatprep.subr.bf16.mxu1 %v2792_v27 }
 0x15a   :  { %1006 = vmatpush1.bf16.msra.mxu0 %v2745_v19  ;;  %1049 = vmatpush1.bf16.msra.mxu1 %v2808_v30  ;;  %v835_v19 = vunpack.c.l.bf16 %v3010_v8 }
 0x15b   :  { %1007 = vmatprep.subr.bf16.mxu0 %v2751_v20  ;;  %1050 = vmatprep.subr.bf16.mxu1 %v2825_v33  ;;  %v3677_v20 = vld [vmem:[#allocation12_spill] sm:$0xff] }
 0x15c   :  { %v837_v50 = vunpack.c.l.bf16 %v3677_v20  ;;  %v841_v52 = vunpack.c.h.bf16 %v3677_v20 }
 0x15e   :  { %1008 = vmatpush1.bf16.msra.mxu0 %v2771_v24  ;;  %1051 = vmatpush1.bf16.msra.mxu1 %v2841_v35 }
 0x15f   :  { %1009 = vmatprep.subr.bf16.mxu0 %v2778_v25  ;;  %1052 = vmatprep.subr.bf16.mxu1 %v2853_v37 }
 0x162   :  { %1010 = vmatpush1.bf16.msra.mxu0 %v2798_v28  ;;  %1053 = vmatpush1.bf16.msra.mxu1 %v2868_v40 }
 0x163   :  { %1011 = vmatprep.subr.bf16.mxu0 %v2813_v31  ;;  %1054 = vmatprep.subr.bf16.mxu1 %v2880_v42 }
 0x166   :  { %1012 = vmatpush1.bf16.msra.mxu0 %v2819_v32  ;;  %1055 = vmatpush1.bf16.msra.mxu1 %v2891_v43 }
 0x167   :  { %1013 = vmatprep.subr.bf16.mxu0 %v2832_v34  ;;  %1056 = vmatprep.subr.bf16.mxu1 %v2898_v44 }
 0x16a   :  { %1014 = vmatpush1.bf16.msra.mxu0 %v2848_v36  ;;  %1057 = vmatpush1.bf16.msra.mxu1 %v2908_v46 }
 0x16b   :  { %1015 = vmatprep.subr.bf16.mxu0 %v2863_v39  ;;  %1058 = vmatprep.subr.bf16.mxu1 %v2914_v47 }
 0x16e   :  { %1016 = vmatpush1.bf16.msra.mxu0 %v2874_v41  ;;  %1059 = vmatpush1.bf16.msra.mxu1 %v2924_v48 }
 0x16f   :  { %1159 = vmatprep.subr.bf16.mxu0 %v2696_v11  ;;  %1202 = vmatprep.subr.bf16.mxu1 %v2705_v13  ;;  %v840_v11 = vunpack.c.h.bf16 %v3040_v0 }
 0x224   :  { %v877_v17 = vpop.f32.mrb[28].mxu0  ;;  %v920_v18 = vpop.f32.mrb[44].mxu1 }
 0x225   :  { %v929_v2 = vadd.f32 %v877_v17, %v834_v14  ;;  %v931_v12 = vadd.f32 %v920_v18, %v836_v15  ;;  %v879_v61 = vpop.f32.mrb[29].mxu0  ;;  %v922_v21 = vpop.f32.mrb[45].mxu1 }
 0x226   :  { %v930_v4 = vadd.f32 %v879_v61, %v835_v19  ;;  %v932_v13 = vadd.f32 %v922_v21, %v837_v50  ;;  %v881_v5 = vpop.f32.mrb[30].mxu0  ;;  %v924_v10 = vpop.f32.mrb[46].mxu1 }
 0x227   :  { %v2156_v56 = vmul.f32 -1.442695, %v929_v2  ;;  %v933_v45 = vadd.f32 %v881_v5, %v838_v54  ;;  %v935_v29 = vadd.f32 %v924_v10, %v840_v11  ;;  %v883_v49 = vpop.f32.mrb[31].mxu0  ;;  %v926_v62 = vpop.f32.mrb[47].mxu1 }
 0x228   :  { %v2158_v60 = vmul.f32 -1.442695, %v930_v4  ;;  %v934_v59 = vadd.f32 %v883_v49, %v839_v38  ;;  %v936_v14 = vadd.f32 %v926_v62, %v841_v52  ;;  %v2160_v15 = vmul.f32 -1.442695, %v932_v13 }
 0x229   :  { %2352 = vpow2.f32 %v2156_v56  ;;  %v2157_v6 = vmul.f32 -1.442695, %v933_v45 }
 0x22a   :  { %2354 = vpow2.f32 %v2158_v60  ;;  %v2159_v0 = vmul.f32 -1.442695, %v934_v59  ;;  %v2161_v19 = vmul.f32 -1.442695, %v936_v14 }
 0x22b   :  { %2356 = vpow2.f32 %v2157_v6 }
 0x22c   :  { %2358 = vpow2.f32 %v2159_v0 }
 0x22d   :  { %2360 = vtanh.f32 %v931_v12 }
 0x22e   :  { %2362 = vpow2.f32 %v2160_v15 }
 0x22f   :  { %2364 = vtanh.f32 %v935_v29 }
 0x233   :  { %v2353_v17 = vpop.eup %2352 }
 0x234   :  { %v2355_v8 = vpop.eup %2354  ;;  %v943_v18 = vadd.f32 1.0, %v2353_v17 }
 0x235   :  { %v955_v20 = vadd.f32 1.0, %v2355_v8  ;;  %v2357_v50 = vpop.eup %2356 }
 0x236   :  { %2366 = vrcp.f32 %v943_v18  ;;  %v944_v2 = vadd.f32 1.0, %v2357_v50  ;;  %v2359_v61 = vpop.eup %2358  ;;  %v3186_v18 = vld [vmem:[%s3629_s2 + $0x24] ss:$16 sps:$4 sm:$0xff]  }
 0x237   :  { %2368 = vrcp.f32 %v955_v20  ;;  %v956_v21 = vadd.f32 1.0, %v2359_v61  ;;  %v2361_v54 = vpop.eup %2360 }
 0x238   :  { %2370 = vpow2.f32 %v2161_v19  ;;  %v2363_v11 = vpop.eup %2362  ;;  %v3195_v19 = vld [vmem:[%s3629_s2 + $0x20] ss:$16 sps:$4 sm:$0xff]  }
 0x239   :  { %2372 = vrcp.f32 %v944_v2  ;;  %v2365_v4 = vpop.eup %2364  ;;  %v969_v56 = vadd.f32 1.0, %v2363_v11 }
 0x23a   :  { %2374 = vrcp.f32 %v956_v21 }
 0x23b   :  { %2376 = vrcp.f32 %v969_v56 }
 0x240   :  { %v2367_v13 = vpop.eup %2366 }
 0x241   :  { %v2369_v12 = vpop.eup %2368  ;;  %v977_v5 = vmul.f32 %v2367_v13, %v2361_v54 }
 0x242   :  { %v2371_v10 = vpop.eup %2370  ;;  %v975_v38 = vmul.f32 %v2369_v12, %v3120_v9 }
 0x243   :  { %v2373_v52 = vpop.eup %2372  ;;  %v970_v62 = vadd.f32 1.0, %v2371_v10 }
 0x244   :  { %v3169_v45 = vadd.f32 %v977_v5, %v975_v38  ;;  %v978_v29 = vmul.f32 %v2373_v52, %v2365_v4  ;;  %v2375_v49 = vpop.eup %2374 }
 0x245   :  { %v976_v60 = vmul.f32 %v2375_v49, %v3123_v58  ;;  %v2377_v14 = vpop.eup %2376  ;;  %v3179_v58 = vld [vmem:[%s3629_s2] ss:$16 sps:$4 sm:$0xff]  }
 0x246   :  { %2378 = vtanh.f32 %v3169_v45 }
 0x247   :  { %v3173_v59 = vadd.f32 %v978_v29, %v976_v60  ;;  %2380 = vrcp.f32 %v970_v62 }
 0x249   :  { %2382 = vtanh.f32 %v3173_v59 }
 0x250   :  { %v2379_v6 = vpop.eup %2378 }
 0x251   :  { %v2381_v9 = vpop.eup %2380  ;;  %v983_v15 = vmul.f32 %v2379_v6, %v2377_v14 }
 0x253   :  { %v2383_v0 = vpop.eup %2382 }
 0x254   :  { %v984_v17 = vmul.f32 %v2383_v0, %v2381_v9 }
 0x256   :  { %v1000_v8 = vpack.c.bf16 %v984_v17, %v983_v15 }
 0x258   :  { %1034 = vmatmul.mubr.bf16.vlgmr.msra.gmra.mrb[32].mxu0 %v1000_v8  ;;  %1077 = vmatmul.mubr.bf16.vlgmr.msra.gmra.mrb[48].mxu1 %v1000_v8 }
 0x259   :  { %1160 = vmatpush1.bf16.msra.mxu0 %v3179_v58  ;;  %1203 = vmatpush1.bf16.msra.mxu1 %v2759_v22  ;;  %v3202_v22 = vld [vmem:[%s3629_s2 + $0x44] ss:$16 sps:$4 sm:$0xff]  }
 0x25a   :  { %1161 = vmatprep.subr.bf16.mxu0 %v3186_v18  ;;  %1204 = vmatprep.subr.bf16.mxu1 %v2764_v23  ;;  %v3209_v23 = vld [vmem:[%s3629_s2 + $0x40] ss:$16 sps:$4 sm:$0xff]  }
 0x25b   :  { %1191 = vmatprep.mubr.bf16.mxu0 %v3676_v57  ;;  %1234 = vmatprep.mubr.bf16.mxu1 %v3676_v57 }
 0x25d   :  { %1162 = vmatpush1.bf16.msra.mxu0 %v3195_v19  ;;  %1205 = vmatpush1.bf16.msra.mxu1 %v2785_v26  ;;  %v3216_v26 = vld [vmem:[%s3629_s2 + $0x64] ss:$16 sps:$4 sm:$0xff]  }
 0x25e   :  { %1163 = vmatprep.subr.bf16.mxu0 %v3202_v22  ;;  %1206 = vmatprep.subr.bf16.mxu1 %v2792_v27  ;;  %v3678_v27 = vld [vmem:[#allocation9_spill] sm:$0xff] }
 0x261   :  { %1164 = vmatpush1.bf16.msra.mxu0 %v3209_v23  ;;  %1207 = vmatpush1.bf16.msra.mxu1 %v2808_v30  ;;  %v994_v30 = vunpack.c.l.bf16 %v3056_v63 }
 0x262   :  { %1165 = vmatprep.subr.bf16.mxu0 %v3216_v26  ;;  %1208 = vmatprep.subr.bf16.mxu1 %v2825_v33  ;;  %v3679_v33 = vld [vmem:[#allocation10_spill] sm:$0xff] }
 0x263   :  { %v997_v20 = vunpack.c.h.bf16 %v3679_v33 }
 0x265   :  { %1166 = vmatpush1.bf16.msra.mxu0 %v2771_v24  ;;  %1209 = vmatpush1.bf16.msra.mxu1 %v2841_v35  ;;  %v3241_v24 = vld [vmem:[%s3629_s2 + $0x4] ss:$16 sps:$4 sm:$0xff]  }
 0x266   :  { %1167 = vmatprep.subr.bf16.mxu0 %v2778_v25  ;;  %1210 = vmatprep.subr.bf16.mxu1 %v2853_v37  ;;  %v3247_v25 = vld [vmem:[%s3629_s2 + $0xc] ss:$16 sps:$4 sm:$0xff]   ;;  %v3680_v35 = vld [vmem:[#allocation15_spill] sm:$0xff] }
 0x267   :  { %v999_v50 = vunpack.c.h.bf16 %v3680_v35 }
 0x269   :  { %1168 = vmatpush1.bf16.msra.mxu0 %v2798_v28  ;;  %1211 = vmatpush1.bf16.msra.mxu1 %v2868_v40  ;;  %v992_v28 = vunpack.c.l.bf16 %v3678_v27 }
 0x26a   :  { %1169 = vmatprep.subr.bf16.mxu0 %v2813_v31  ;;  %1212 = vmatprep.subr.bf16.mxu1 %v2880_v42  ;;  %v996_v42 = vunpack.c.h.bf16 %v3678_v27 }
 0x26d   :  { %1170 = vmatpush1.bf16.msra.mxu0 %v2819_v32  ;;  %1213 = vmatpush1.bf16.msra.mxu1 %v2891_v43  ;;  %v998_v43 = vunpack.c.h.bf16 %v3056_v63 }
 0x26e   :  { %1171 = vmatprep.subr.bf16.mxu0 %v2832_v34  ;;  %1214 = vmatprep.subr.bf16.mxu1 %v2898_v44  ;;  %v993_v34 = vunpack.c.l.bf16 %v3679_v33 }
 0x271   :  { %1172 = vmatpush1.bf16.msra.mxu0 %v2848_v36  ;;  %1215 = vmatpush1.bf16.msra.mxu1 %v2908_v46  ;;  %v995_v36 = vunpack.c.l.bf16 %v3680_v35 }
 0x272   :  { %1173 = vmatprep.subr.bf16.mxu0 %v2863_v39  ;;  %1216 = vmatprep.subr.bf16.mxu1 %v2914_v47 }
 0x275   :  { %1174 = vmatpush1.bf16.msra.mxu0 %v2874_v41  ;;  %1217 = vmatpush1.bf16.msra.mxu1 %v2924_v48 }
 0x276   :  { %1317 = vmatprep.subr.bf16.mxu0 %v3241_v24  ;;  %1360 = vmatprep.subr.bf16.mxu1 %v3247_v25 }
 0x32b   :  { %v1035_v31 = vpop.f32.mrb[32].mxu0  ;;  %v1078_v32 = vpop.f32.mrb[48].mxu1 }
 0x32c   :  { %v1087_v37 = vadd.f32 %v1035_v31, %v992_v28  ;;  %v1089_v39 = vadd.f32 %v1078_v32, %v994_v30  ;;  %v1037_v40 = vpop.f32.mrb[33].mxu0  ;;  %v1080_v41 = vpop.f32.mrb[49].mxu1 }
 0x32d   :  { %v1088_v44 = vadd.f32 %v1037_v40, %v993_v34  ;;  %v1090_v46 = vadd.f32 %v1080_v41, %v995_v36  ;;  %v1039_v47 = vpop.f32.mrb[34].mxu0  ;;  %v1082_v48 = vpop.f32.mrb[50].mxu1 }
 0x32e   :  { %v2162_v2 = vmul.f32 -1.442695, %v1087_v37  ;;  %v1091_v61 = vadd.f32 %v1039_v47, %v996_v42  ;;  %v1093_v21 = vadd.f32 %v1082_v48, %v998_v43  ;;  %v1041_v54 = vpop.f32.mrb[35].mxu0  ;;  %v1084_v11 = vpop.f32.mrb[51].mxu1  ;;  %v3277_v47 = vld [vmem:[%s3629_s2 + $0x2c] ss:$16 sps:$4 sm:$0xff]  }
 0x32f   :  { %v2164_v4 = vmul.f32 -1.442695, %v1088_v44  ;;  %v1092_v13 = vadd.f32 %v1041_v54, %v997_v20  ;;  %v1094_v12 = vadd.f32 %v1084_v11, %v999_v50  ;;  %v2166_v10 = vmul.f32 -1.442695, %v1090_v46  ;;  %v3286_v48 = vld [vmem:[%s3629_s2 + $0x28] ss:$16 sps:$4 sm:$0xff]  }
 0x330   :  { %2384 = vpow2.f32 %v2162_v2  ;;  %v2163_v5 = vmul.f32 -1.442695, %v1091_v61  ;;  %v3293_v20 = vld [vmem:[%s3629_s2 + $0x4c] ss:$16 sps:$4 sm:$0xff]   ;;  %v3300_v50 = vld [vmem:[%s3629_s2 + $0x48] ss:$16 sps:$4 sm:$0xff]  }
 0x331   :  { %2386 = vpow2.f32 %v2164_v4  ;;  %v2165_v63 = vmul.f32 -1.442695, %v1092_v13  ;;  %v2167_v29 = vmul.f32 -1.442695, %v1094_v12  ;;  %v3307_v2 = vld [vmem:[%s3629_s2 + $0x6c] ss:$16 sps:$4 sm:$0xff]  }
 0x332   :  { %2388 = vpow2.f32 %v2163_v5  ;;  %v3313_v61 = vld [vmem:[%s3629_s2 + $0x60] ss:$16 sps:$4 sm:$0xff]   ;;  %v3325_v54 = vld [vmem:[%s3629_s2 + $0x84] ss:$16 sps:$4 sm:$0xff]   ;;  %v3331_v11 = vld [vmem:[%s3629_s2 + $0x8c] ss:$16 sps:$4 sm:$0xff]  }
 0x333   :  { %2390 = vpow2.f32 %v2165_v63  ;;  %v3337_v4 = vld [vmem:[%s3629_s2 + $0x80] ss:$16 sps:$4 sm:$0xff]   ;;  %v3343_v13 = vld [vmem:[%s3629_s2 + $0x88] ss:$16 sps:$4 sm:$0xff]   ;;  %v3349_v12 = vld [vmem:[%s3629_s2 + $0xa4] ss:$16 sps:$4 sm:$0xff]  }
 0x334   :  { %2392 = vtanh.f32 %v1089_v39  ;;  %v3355_v5 = vld [vmem:[%s3629_s2 + $0xac] ss:$16 sps:$4 sm:$0xff]   ;;  %v3361_v63 = vld [vmem:[%s3629_s2 + $0xa0] ss:$16 sps:$4 sm:$0xff]  }
 0x335   :  { %2394 = vpow2.f32 %v2166_v10  ;;  %v3367_v10 = vld [vmem:[%s3629_s2 + $0xa8] ss:$16 sps:$4 sm:$0xff]  }
 0x336   :  { %2396 = vtanh.f32 %v1093_v21  ;;  %v3319_v21 = vld [vmem:[%s3629_s2 + $0x68] ss:$16 sps:$4 sm:$0xff]  }
 0x33a   :  { %v2385_v38 = vpop.eup %2384 }
 0x33b   :  { %v2387_v52 = vpop.eup %2386  ;;  %v1101_v56 = vadd.f32 1.0, %v2385_v38  ;;  %v3373_v38 = vld [vmem:[%s3629_s2 + $0xc4] ss:$16 sps:$4 sm:$0xff]  }
 0x33c   :  { %v1113_v49 = vadd.f32 1.0, %v2387_v52  ;;  %v2389_v62 = vpop.eup %2388  ;;  %v3379_v52 = vld [vmem:[%s3629_s2 + $0xcc] ss:$16 sps:$4 sm:$0xff]  }
 0x33d   :  { %2398 = vrcp.f32 %v1101_v56  ;;  %v1102_v60 = vadd.f32 1.0, %v2389_v62  ;;  %v2391_v14 = vpop.eup %2390  ;;  %v3385_v56 = vld [vmem:[%s3629_s2 + $0xc0] ss:$16 sps:$4 sm:$0xff]   ;;  %v3403_v62 = vld [vmem:[%s3629_s2 + $0xec] ss:$16 sps:$4 sm:$0xff]  }
 0x33e   :  { %2400 = vrcp.f32 %v1113_v49  ;;  %v1114_v6 = vadd.f32 1.0, %v2391_v14  ;;  %v2393_v9 = vpop.eup %2392  ;;  %v3397_v49 = vld [vmem:[%s3629_s2 + $0xe4] ss:$16 sps:$4 sm:$0xff]   ;;  %v3415_v14 = vld [vmem:[%s3629_s2 + $0xe8] ss:$16 sps:$4 sm:$0xff]  }
 0x33f   :  { %2402 = vpow2.f32 %v2167_v29  ;;  %v2395_v0 = vpop.eup %2394  ;;  %v3391_v29 = vld [vmem:[%s3629_s2 + $0xc8] ss:$16 sps:$4 sm:$0xff]  }
 0x340   :  { %2404 = vrcp.f32 %v1102_v60  ;;  %v2397_v15 = vpop.eup %2396  ;;  %v1127_v32 = vadd.f32 1.0, %v2395_v0  ;;  %v3409_v60 = vld [vmem:[%s3629_s2 + $0xe0] ss:$16 sps:$4 sm:$0xff]   ;;  %v1152_v0 = vunpack.c.l.bf16 %v3072_v53 }
 0x341   :  { %2406 = vrcp.f32 %v1114_v6  ;;  %v3681_v6 = vld [vmem:[#allocation11_spill] sm:$0xff] }
 0x342   :  { %2408 = vrcp.f32 %v1127_v32 }
 0x347   :  { %v2399_v17 = vpop.eup %2398 }
 0x348   :  { %v2401_v8 = vpop.eup %2400  ;;  %v1135_v27 = vmul.f32 %v2399_v17, %v2393_v9  ;;  %v1150_v9 = vunpack.c.l.bf16 %v3681_v6 }
 0x349   :  { %v2403_v28 = vpop.eup %2402  ;;  %v1133_v30 = vmul.f32 %v2401_v8, %v3169_v45  ;;  %v3682_v8 = vld [vmem:[#allocation13_spill] sm:$0xff] }
 0x34a   :  { %v2405_v31 = vpop.eup %2404  ;;  %v1128_v36 = vadd.f32 1.0, %v2403_v28  ;;  %v3683_v28 = vld [vmem:[#allocation18_spill] sm:$0xff] }
 0x34b   :  { %v3259_v33 = vadd.f32 %v1135_v27, %v1133_v30  ;;  %v1136_v34 = vmul.f32 %v2405_v31, %v2397_v15  ;;  %v2407_v35 = vpop.eup %2406  ;;  %v1151_v27 = vunpack.c.l.bf16 %v3682_v8  ;;  %v1153_v30 = vunpack.c.l.bf16 %v3683_v28 }
 0x34c   :  { %v1134_v37 = vmul.f32 %v2407_v35, %v3173_v59  ;;  %v2409_v40 = vpop.eup %2408  ;;  %v3270_v59 = vld [vmem:[%s3629_s2 + $0x8] ss:$16 sps:$4 sm:$0xff]  }
 0x34d   :  { %2410 = vtanh.f32 %v3259_v33 }
 0x34e   :  { %v3263_v39 = vadd.f32 %v1136_v34, %v1134_v37  ;;  %2412 = vrcp.f32 %v1128_v36  ;;  %v1154_v36 = vunpack.c.h.bf16 %v3681_v6  ;;  %v1156_v37 = vunpack.c.h.bf16 %v3072_v53 }
 0x350   :  { %2414 = vtanh.f32 %v3263_v39 }
 0x357   :  { %v2411_v41 = vpop.eup %2410 }
 0x358   :  { %v2413_v45 = vpop.eup %2412  ;;  %v1141_v43 = vmul.f32 %v2411_v41, %v2409_v40 }
 0x35a   :  { %v2415_v42 = vpop.eup %2414 }
 0x35b   :  { %v1142_v44 = vmul.f32 %v2415_v42, %v2413_v45 }
 0x35d   :  { %v1158_v46 = vpack.c.bf16 %v1142_v44, %v1141_v43  ;;  %v1155_v43 = vunpack.c.h.bf16 %v3682_v8  ;;  %v1157_v44 = vunpack.c.h.bf16 %v3683_v28 }
 0x35f   :  { %1192 = vmatmul.mubr.bf16.vlgmr.msra.gmra.mrb[36].mxu0 %v1158_v46  ;;  %1235 = vmatmul.mubr.bf16.vlgmr.msra.gmra.mrb[52].mxu1 %v1158_v46 }
 0x360   :  { %1318 = vmatpush1.bf16.msra.mxu0 %v3179_v58  ;;  %1361 = vmatpush1.bf16.msra.mxu1 %v3270_v59 }
 0x361   :  { %1319 = vmatprep.subr.bf16.mxu0 %v3186_v18  ;;  %1362 = vmatprep.subr.bf16.mxu1 %v3277_v47 }
 0x362   :  { %1349 = vmatprep.mubr.bf16.mxu0 %v3676_v57  ;;  %1392 = vmatprep.mubr.bf16.mxu1 %v3676_v57 }
 0x364   :  { %1320 = vmatpush1.bf16.msra.mxu0 %v3195_v19  ;;  %1363 = vmatpush1.bf16.msra.mxu1 %v3286_v48 }
 0x365   :  { %1321 = vmatprep.subr.bf16.mxu0 %v3202_v22  ;;  %1364 = vmatprep.subr.bf16.mxu1 %v3293_v20 }
 0x368   :  { %1322 = vmatpush1.bf16.msra.mxu0 %v3209_v23  ;;  %1365 = vmatpush1.bf16.msra.mxu1 %v3300_v50 }
 0x369   :  { %1323 = vmatprep.subr.bf16.mxu0 %v3216_v26  ;;  %1366 = vmatprep.subr.bf16.mxu1 %v3307_v2 }
 0x36c   :  { %1324 = vmatpush1.bf16.msra.mxu0 %v3313_v61  ;;  %1367 = vmatpush1.bf16.msra.mxu1 %v3319_v21 }
 0x36d   :  { %1325 = vmatprep.subr.bf16.mxu0 %v3325_v54  ;;  %1368 = vmatprep.subr.bf16.mxu1 %v3331_v11 }
 0x370   :  { %1326 = vmatpush1.bf16.msra.mxu0 %v3337_v4  ;;  %1369 = vmatpush1.bf16.msra.mxu1 %v3343_v13 }
 0x371   :  { %1327 = vmatprep.subr.bf16.mxu0 %v3349_v12  ;;  %1370 = vmatprep.subr.bf16.mxu1 %v3355_v5 }
 0x374   :  { %1328 = vmatpush1.bf16.msra.mxu0 %v3361_v63  ;;  %1371 = vmatpush1.bf16.msra.mxu1 %v3367_v10 }
 0x375   :  { %1329 = vmatprep.subr.bf16.mxu0 %v3373_v38  ;;  %1372 = vmatprep.subr.bf16.mxu1 %v3379_v52 }
 0x378   :  { %1330 = vmatpush1.bf16.msra.mxu0 %v3385_v56  ;;  %1373 = vmatpush1.bf16.msra.mxu1 %v3391_v29 }
 0x379   :  { %1331 = vmatprep.subr.bf16.mxu0 %v3397_v49  ;;  %1374 = vmatprep.subr.bf16.mxu1 %v3403_v62 }
 0x37c   :  { %1332 = vmatpush1.bf16.msra.mxu0 %v3409_v60  ;;  %1375 = vmatpush1.bf16.msra.mxu1 %v3415_v14 }
 0x37d   :  { %1475 = vmatprep.subr.bf16.mxu0 %v3241_v24  ;;  %1518 = vmatprep.subr.bf16.mxu1 %v3247_v25 }
 0x432   :  { %v1193_v15 = vpop.f32.mrb[36].mxu0  ;;  %v1236_v17 = vpop.f32.mrb[52].mxu1 }
 0x433   :  { %v1245_v31 = vadd.f32 %v1193_v15, %v1150_v9  ;;  %v1247_v32 = vadd.f32 %v1236_v17, %v1152_v0  ;;  %v1195_v34 = vpop.f32.mrb[37].mxu0  ;;  %v1238_v35 = vpop.f32.mrb[53].mxu1 }
 0x434   :  { %v1246_v40 = vadd.f32 %v1195_v34, %v1151_v27  ;;  %v1248_v41 = vadd.f32 %v1238_v35, %v1153_v30  ;;  %v1197_v45 = vpop.f32.mrb[38].mxu0  ;;  %v1240_v42 = vpop.f32.mrb[54].mxu1 }
 0x435   :  { %v2168_v46 = vmul.f32 -1.442695, %v1245_v31  ;;  %v1249_v16 = vadd.f32 %v1197_v45, %v1154_v36  ;;  %v1251_v1 = vadd.f32 %v1240_v42, %v1156_v37  ;;  %v1199_v55 = vpop.f32.mrb[39].mxu0  ;;  %v1242_v9 = vpop.f32.mrb[55].mxu1 }
 0x436   :  { %v2170_v0 = vmul.f32 -1.442695, %v1246_v40  ;;  %v1250_v15 = vadd.f32 %v1199_v55, %v1155_v43  ;;  %v1252_v17 = vadd.f32 %v1242_v9, %v1157_v44  ;;  %v2172_v27 = vmul.f32 -1.442695, %v1248_v41 }
 0x437   :  { %2416 = vpow2.f32 %v2168_v46  ;;  %v2169_v6 = vmul.f32 -1.442695, %v1249_v16 }
 0x438   :  { %2418 = vpow2.f32 %v2170_v0  ;;  %v2171_v53 = vmul.f32 -1.442695, %v1250_v15  ;;  %v2173_v28 = vmul.f32 -1.442695, %v1252_v17 }
 0x439   :  { %2420 = vpow2.f32 %v2169_v6 }
 0x43a   :  { %2422 = vpow2.f32 %v2171_v53 }
 0x43b   :  { %2424 = vtanh.f32 %v1247_v32 }
 0x43c   :  { %2426 = vpow2.f32 %v2172_v27 }
 0x43d   :  { %2428 = vtanh.f32 %v1251_v1 }
 0x441   :  { %v2417_v30 = vpop.eup %2416 }
 0x442   :  { %v2419_v8 = vpop.eup %2418  ;;  %v1259_v34 = vadd.f32 1.0, %v2417_v30 }
 0x443   :  { %v1271_v31 = vadd.f32 1.0, %v2419_v8  ;;  %v2421_v35 = vpop.eup %2420 }
 0x444   :  { %2430 = vrcp.f32 %v1259_v34  ;;  %v1260_v55 = vadd.f32 1.0, %v2421_v35  ;;  %v2423_v36 = vpop.eup %2422 }
 0x445   :  { %2432 = vrcp.f32 %v1271_v31  ;;  %v1272_v16 = vadd.f32 1.0, %v2423_v36  ;;  %v2425_v37 = vpop.eup %2424 }
 0x446   :  { %2434 = vpow2.f32 %v2173_v28  ;;  %v2427_v40 = vpop.eup %2426 }
 0x447   :  { %2436 = vrcp.f32 %v1260_v55  ;;  %v2429_v41 = vpop.eup %2428  ;;  %v1285_v1 = vadd.f32 1.0, %v2427_v40  ;;  %v1310_v55 = vunpack.c.l.bf16 %v3088_v3 }
 0x448   :  { %2438 = vrcp.f32 %v1272_v16 }
 0x449   :  { %2440 = vrcp.f32 %v1285_v1 }
 0x44e   :  { %v2431_v45 = vpop.eup %2430 }
 0x44f   :  { %v2433_v32 = vpop.eup %2432  ;;  %v1293_v42 = vmul.f32 %v2431_v45, %v2425_v37  ;;  %v3685_v37 = vld [vmem:[#allocation16_spill] sm:$0xff] }
 0x450   :  { %v2435_v43 = vpop.eup %2434  ;;  %v1291_v44 = vmul.f32 %v2433_v32, %v3259_v33  ;;  %v1309_v40 = vunpack.c.l.bf16 %v3685_v37 }
 0x451   :  { %v2437_v46 = vpop.eup %2436  ;;  %v1286_v17 = vadd.f32 1.0, %v2435_v43 }
 0x452   :  { %v3429_v9 = vadd.f32 %v1293_v42, %v1291_v44  ;;  %v1294_v0 = vmul.f32 %v2437_v46, %v2429_v41  ;;  %v2439_v15 = vpop.eup %2438  ;;  %v1311_v41 = vunpack.c.l.bf16 %v3090_v51  ;;  %v1314_v46 = vunpack.c.h.bf16 %v3088_v3 }
 0x453   :  { %v1292_v6 = vmul.f32 %v2439_v15, %v3263_v39  ;;  %v2441_v27 = vpop.eup %2440  ;;  %v3684_v39 = vld [vmem:[#allocation14_spill] sm:$0xff] }
 0x454   :  { %2442 = vtanh.f32 %v3429_v9  ;;  %v1308_v35 = vunpack.c.l.bf16 %v3684_v39  ;;  %v1312_v44 = vunpack.c.h.bf16 %v3684_v39 }
 0x455   :  { %v3433_v53 = vadd.f32 %v1294_v0, %v1292_v6  ;;  %2444 = vrcp.f32 %v1286_v17  ;;  %v1313_v6 = vunpack.c.h.bf16 %v3685_v37 }
 0x457   :  { %2446 = vtanh.f32 %v3433_v53 }
 0x45e   :  { %v2443_v30 = vpop.eup %2442 }
 0x45f   :  { %v2445_v33 = vpop.eup %2444  ;;  %v1299_v34 = vmul.f32 %v2443_v30, %v2441_v27  ;;  %v1315_v27 = vunpack.c.h.bf16 %v3090_v51 }
 0x461   :  { %v2447_v8 = vpop.eup %2446 }
 0x462   :  { %v1300_v28 = vmul.f32 %v2447_v8, %v2445_v33 }
 0x464   :  { %v1316_v31 = vpack.c.bf16 %v1300_v28, %v1299_v34 }
 0x466   :  { %1350 = vmatmul.mubr.bf16.vlgmr.msra.gmra.mrb[40].mxu0 %v1316_v31  ;;  %1393 = vmatmul.mubr.bf16.vlgmr.msra.gmra.mrb[56].mxu1 %v1316_v31 }
 0x467   :  { %1476 = vmatpush1.bf16.msra.mxu0 %v3179_v58  ;;  %1519 = vmatpush1.bf16.msra.mxu1 %v3270_v59 }
 0x468   :  { %1477 = vmatprep.subr.bf16.mxu0 %v3186_v18  ;;  %1520 = vmatprep.subr.bf16.mxu1 %v3277_v47 }
 0x469   :  { %1507 = vmatprep.mubr.bf16.mxu0 %v3676_v57  ;;  %1550 = vmatprep.mubr.bf16.mxu1 %v3676_v57 }
 0x46b   :  { %1478 = vmatpush1.bf16.msra.mxu0 %v3195_v19  ;;  %1521 = vmatpush1.bf16.msra.mxu1 %v3286_v48 }
 0x46c   :  { %1479 = vmatprep.subr.bf16.mxu0 %v3202_v22  ;;  %1522 = vmatprep.subr.bf16.mxu1 %v3293_v20 }
 0x46f   :  { %1480 = vmatpush1.bf16.msra.mxu0 %v3209_v23  ;;  %1523 = vmatpush1.bf16.msra.mxu1 %v3300_v50 }
 0x470   :  { %1481 = vmatprep.subr.bf16.mxu0 %v3216_v26  ;;  %1524 = vmatprep.subr.bf16.mxu1 %v3307_v2 }
 0x473   :  { %1482 = vmatpush1.bf16.msra.mxu0 %v3313_v61  ;;  %1525 = vmatpush1.bf16.msra.mxu1 %v3319_v21 }
 0x474   :  { %1483 = vmatprep.subr.bf16.mxu0 %v3325_v54  ;;  %1526 = vmatprep.subr.bf16.mxu1 %v3331_v11 }
 0x477   :  { %1484 = vmatpush1.bf16.msra.mxu0 %v3337_v4  ;;  %1527 = vmatpush1.bf16.msra.mxu1 %v3343_v13 }
 0x478   :  { %1485 = vmatprep.subr.bf16.mxu0 %v3349_v12  ;;  %1528 = vmatprep.subr.bf16.mxu1 %v3355_v5 }
 0x47b   :  { %1486 = vmatpush1.bf16.msra.mxu0 %v3361_v63  ;;  %1529 = vmatpush1.bf16.msra.mxu1 %v3367_v10 }
 0x47c   :  { %1487 = vmatprep.subr.bf16.mxu0 %v3373_v38  ;;  %1530 = vmatprep.subr.bf16.mxu1 %v3379_v52 }
 0x47f   :  { %1488 = vmatpush1.bf16.msra.mxu0 %v3385_v56  ;;  %1531 = vmatpush1.bf16.msra.mxu1 %v3391_v29 }
 0x480   :  { %1489 = vmatprep.subr.bf16.mxu0 %v3397_v49  ;;  %1532 = vmatprep.subr.bf16.mxu1 %v3403_v62 }
 0x483   :  { %1490 = vmatpush1.bf16.msra.mxu0 %v3409_v60  ;;  %1533 = vmatpush1.bf16.msra.mxu1 %v3415_v14 }
 0x484   :  { %1633 = vmatprep.subr.bf16.mxu0 %v3241_v24  ;;  %1676 = vmatprep.subr.bf16.mxu1 %v3247_v25 }
 0x539   :  { %v1351_v36 = vpop.f32.mrb[40].mxu0  ;;  %v1394_v16 = vpop.f32.mrb[56].mxu1 }
 0x53a   :  { %v1403_v45 = vadd.f32 %v1351_v36, %v1308_v35  ;;  %v1405_v32 = vadd.f32 %v1394_v16, %v1310_v55  ;;  %v1353_v42 = vpop.f32.mrb[41].mxu0  ;;  %v1396_v43 = vpop.f32.mrb[57].mxu1 }
 0x53b   :  { %v1404_v1 = vadd.f32 %v1353_v42, %v1309_v40  ;;  %v1406_v0 = vadd.f32 %v1396_v43, %v1311_v41  ;;  %v1355_v15 = vpop.f32.mrb[42].mxu0  ;;  %v1398_v17 = vpop.f32.mrb[58].mxu1 }
 0x53c   :  { %v2174_v30 = vmul.f32 -1.442695, %v1403_v45  ;;  %v1407_v33 = vadd.f32 %v1355_v15, %v1312_v44  ;;  %v1409_v8 = vadd.f32 %v1398_v17, %v1314_v46  ;;  %v1357_v34 = vpop.f32.mrb[43].mxu0  ;;  %v1400_v28 = vpop.f32.mrb[59].mxu1 }
 0x53d   :  { %v2176_v31 = vmul.f32 -1.442695, %v1404_v1  ;;  %v1408_v35 = vadd.f32 %v1357_v34, %v1313_v6  ;;  %v1410_v55 = vadd.f32 %v1400_v28, %v1315_v27  ;;  %v2178_v36 = vmul.f32 -1.442695, %v1406_v0 }
 0x53e   :  { %2448 = vpow2.f32 %v2174_v30  ;;  %v2175_v39 = vmul.f32 -1.442695, %v1407_v33 }
 0x53f   :  { %2450 = vpow2.f32 %v2176_v31  ;;  %v2177_v3 = vmul.f32 -1.442695, %v1408_v35  ;;  %v2179_v51 = vmul.f32 -1.442695, %v1410_v55 }
 0x540   :  { %2452 = vpow2.f32 %v2175_v39 }
 0x541   :  { %2454 = vpow2.f32 %v2177_v3 }
 0x542   :  { %2456 = vtanh.f32 %v1405_v32 }
 0x543   :  { %2458 = vpow2.f32 %v2178_v36 }
 0x544   :  { %2460 = vtanh.f32 %v1409_v8 }
 0x548   :  { %v2449_v16 = vpop.eup %2448 }
 0x549   :  { %v2451_v37 = vpop.eup %2450  ;;  %v1417_v40 = vadd.f32 1.0, %v2449_v16 }
 0x54a   :  { %v1429_v41 = vadd.f32 1.0, %v2451_v37  ;;  %v2453_v45 = vpop.eup %2452 }
 0x54b   :  { %2462 = vrcp.f32 %v1417_v40  ;;  %v1418_v42 = vadd.f32 1.0, %v2453_v45  ;;  %v2455_v43 = vpop.eup %2454 }
 0x54c   :  { %2464 = vrcp.f32 %v1429_v41  ;;  %v1430_v44 = vadd.f32 1.0, %v2455_v43  ;;  %v2457_v46 = vpop.eup %2456  ;;  %v1468_v41 = vunpack.c.l.bf16 %v3096_v7  ;;  %v3687_v43 = vld [vmem:[#allocation19_spill] sm:$0xff] }
 0x54d   :  { %2466 = vpow2.f32 %v2179_v51  ;;  %v2459_v1 = vpop.eup %2458 }
 0x54e   :  { %2468 = vrcp.f32 %v1418_v42  ;;  %v2461_v0 = vpop.eup %2460  ;;  %v1443_v33 = vadd.f32 1.0, %v2459_v1 }
 0x54f   :  { %2470 = vrcp.f32 %v1430_v44  ;;  %v1467_v44 = vunpack.c.l.bf16 %v3687_v43 }
 0x550   :  { %2472 = vrcp.f32 %v1443_v33 }
 0x555   :  { %v2463_v15 = vpop.eup %2462 }
 0x556   :  { %v2465_v32 = vpop.eup %2464  ;;  %v1451_v17 = vmul.f32 %v2463_v15, %v2457_v46  ;;  %v3688_v46 = vld [vmem:[#allocation20_spill] sm:$0xff] }
 0x557   :  { %v2467_v6 = vpop.eup %2466  ;;  %v1449_v27 = vmul.f32 %v2465_v32, %v3429_v9  ;;  %v1469_v1 = vunpack.c.l.bf16 %v3688_v46 }
 0x558   :  { %v2469_v30 = vpop.eup %2468  ;;  %v1444_v31 = vadd.f32 1.0, %v2467_v6 }
 0x559   :  { %v3479_v8 = vadd.f32 %v1451_v17, %v1449_v27  ;;  %v1452_v34 = vmul.f32 %v2469_v30, %v2461_v0  ;;  %v2471_v28 = vpop.eup %2470 }
 0x55a   :  { %v1450_v35 = vmul.f32 %v2471_v28, %v3433_v53  ;;  %v2473_v39 = vpop.eup %2472  ;;  %v3686_v53 = vld [vmem:[#allocation17_spill] sm:$0xff]  ;;  %v1473_v28 = vunpack.c.h.bf16 %v3688_v46 }
 0x55b   :  { %2474 = vtanh.f32 %v3479_v8  ;;  %v1466_v51 = vunpack.c.l.bf16 %v3686_v53  ;;  %v1470_v6 = vunpack.c.h.bf16 %v3686_v53 }
 0x55c   :  { %v3483_v55 = vadd.f32 %v1452_v34, %v1450_v35  ;;  %2476 = vrcp.f32 %v1444_v31  ;;  %v1471_v34 = vunpack.c.h.bf16 %v3687_v43 }
 0x55e   :  { %2478 = vtanh.f32 %v3483_v55 }
 0x565   :  { %v2475_v3 = vpop.eup %2474 }
 0x566   :  { %v2477_v9 = vpop.eup %2476  ;;  %v1457_v16 = vmul.f32 %v2475_v3, %v2473_v39 }
 0x568   :  { %v2479_v36 = vpop.eup %2478 }
 0x569   :  { %v1458_v37 = vmul.f32 %v2479_v36, %v2477_v9 }
 0x56b   :  { %v1474_v40 = vpack.c.bf16 %v1458_v37, %v1457_v16 }
 0x56d   :  { %1508 = vmatmul.mubr.bf16.vlgmr.msra.gmra.mrb[44].mxu0 %v1474_v40  ;;  %1551 = vmatmul.mubr.bf16.vlgmr.msra.gmra.mrb[60].mxu1 %v1474_v40 }
 0x56e   :  { %1634 = vmatpush1.bf16.msra.mxu0 %v3179_v58  ;;  %1677 = vmatpush1.bf16.msra.mxu1 %v3270_v59 }
 0x56f   :  { %1635 = vmatprep.subr.bf16.mxu0 %v3186_v18  ;;  %1678 = vmatprep.subr.bf16.mxu1 %v3277_v47 }
 0x570   :  { %1665 = vmatprep.mubr.bf16.mxu0 %v3676_v57  ;;  %1708 = vmatprep.mubr.bf16.mxu1 %v3676_v57 }
 0x572   :  { %1636 = vmatpush1.bf16.msra.mxu0 %v3195_v19  ;;  %1679 = vmatpush1.bf16.msra.mxu1 %v3286_v48 }
 0x573   :  { %1637 = vmatprep.subr.bf16.mxu0 %v3202_v22  ;;  %1680 = vmatprep.subr.bf16.mxu1 %v3293_v20 }
 0x576   :  { %1638 = vmatpush1.bf16.msra.mxu0 %v3209_v23  ;;  %1681 = vmatpush1.bf16.msra.mxu1 %v3300_v50 }
 0x577   :  { %1639 = vmatprep.subr.bf16.mxu0 %v3216_v26  ;;  %1682 = vmatprep.subr.bf16.mxu1 %v3307_v2 }
 0x57a   :  { %1640 = vmatpush1.bf16.msra.mxu0 %v3313_v61  ;;  %1683 = vmatpush1.bf16.msra.mxu1 %v3319_v21 }
 0x57b   :  { %1641 = vmatprep.subr.bf16.mxu0 %v3325_v54  ;;  %1684 = vmatprep.subr.bf16.mxu1 %v3331_v11 }
 0x57e   :  { %1642 = vmatpush1.bf16.msra.mxu0 %v3337_v4  ;;  %1685 = vmatpush1.bf16.msra.mxu1 %v3343_v13 }
 0x57f   :  { %1643 = vmatprep.subr.bf16.mxu0 %v3349_v12  ;;  %1686 = vmatprep.subr.bf16.mxu1 %v3355_v5 }
 0x582   :  { %1644 = vmatpush1.bf16.msra.mxu0 %v3361_v63  ;;  %1687 = vmatpush1.bf16.msra.mxu1 %v3367_v10 }
 0x583   :  { %1645 = vmatprep.subr.bf16.mxu0 %v3373_v38  ;;  %1688 = vmatprep.subr.bf16.mxu1 %v3379_v52 }
 0x586   :  { %1646 = vmatpush1.bf16.msra.mxu0 %v3385_v56  ;;  %1689 = vmatpush1.bf16.msra.mxu1 %v3391_v29 }
 0x587   :  { %1647 = vmatprep.subr.bf16.mxu0 %v3397_v49  ;;  %1690 = vmatprep.subr.bf16.mxu1 %v3403_v62 }
 0x58a   :  { %1648 = vmatpush1.bf16.msra.mxu0 %v3409_v60  ;;  %1691 = vmatpush1.bf16.msra.mxu1 %v3415_v14 }
 0x58b   :  { %1791 = vmatprep.subr.bf16.mxu0 %v3241_v24  ;;  %1834 = vmatprep.subr.bf16.mxu1 %v3247_v25  ;;  %v1472_v24 = vunpack.c.h.bf16 %v3096_v7 }
 0x640   :  { %v1509_v45 = vpop.f32.mrb[44].mxu0  ;;  %v1552_v42 = vpop.f32.mrb[60].mxu1 }
 0x641   :  { %v1561_v0 = vadd.f32 %v1509_v45, %v1466_v51  ;;  %v1563_v15 = vadd.f32 %v1552_v42, %v1468_v41  ;;  %v1511_v32 = vpop.f32.mrb[45].mxu0  ;;  %v1554_v17 = vpop.f32.mrb[61].mxu1 }
 0x642   :  { %v1562_v27 = vadd.f32 %v1511_v32, %v1467_v44  ;;  %v1564_v25 = vadd.f32 %v1554_v17, %v1469_v1  ;;  %v1513_v30 = vpop.f32.mrb[46].mxu0  ;;  %v1556_v33 = vpop.f32.mrb[62].mxu1 }
 0x643   :  { %v2180_v31 = vmul.f32 -1.442695, %v1561_v0  ;;  %v1565_v35 = vadd.f32 %v1513_v30, %v1470_v6  ;;  %v1567_v39 = vadd.f32 %v1556_v33, %v1472_v24  ;;  %v1515_v3 = vpop.f32.mrb[47].mxu0  ;;  %v1558_v9 = vpop.f32.mrb[63].mxu1 }
 0x644   :  { %v2182_v36 = vmul.f32 -1.442695, %v1562_v27  ;;  %v1566_v16 = vadd.f32 %v1515_v3, %v1471_v34  ;;  %v1568_v37 = vadd.f32 %v1558_v9, %v1473_v28  ;;  %v2184_v53 = vmul.f32 -1.442695, %v1564_v25 }
 0x645   :  { %2480 = vpow2.f32 %v2180_v31  ;;  %v2181_v40 = vmul.f32 -1.442695, %v1565_v35 }
 0x646   :  { %2482 = vpow2.f32 %v2182_v36  ;;  %v2183_v7 = vmul.f32 -1.442695, %v1566_v16  ;;  %v2185_v42 = vmul.f32 -1.442695, %v1568_v37 }
 0x647   :  { %2484 = vpow2.f32 %v2181_v40 }
 0x648   :  { %2486 = vpow2.f32 %v2183_v7 }
 0x649   :  { %2488 = vtanh.f32 %v1563_v15 }
 0x64a   :  { %2490 = vpow2.f32 %v2184_v53 }
 0x64b   :  { %2492 = vtanh.f32 %v1567_v39 }
 0x64f   :  { %v2481_v51 = vpop.eup %2480 }
 0x650   :  { %v2483_v41 = vpop.eup %2482  ;;  %v1575_v45 = vadd.f32 1.0, %v2481_v51 }
 0x651   :  { %v1587_v43 = vadd.f32 1.0, %v2483_v41  ;;  %v2485_v44 = vpop.eup %2484 }
 0x652   :  { %2494 = vrcp.f32 %v1575_v45  ;;  %v1576_v46 = vadd.f32 1.0, %v2485_v44  ;;  %v2487_v1 = vpop.eup %2486 }
 0x653   :  { %2496 = vrcp.f32 %v1587_v43  ;;  %v1588_v0 = vadd.f32 1.0, %v2487_v1  ;;  %v2489_v32 = vpop.eup %2488 }
 0x654   :  { %2498 = vpow2.f32 %v2185_v42  ;;  %v2491_v17 = vpop.eup %2490 }
 0x655   :  { %2500 = vrcp.f32 %v1576_v46  ;;  %v2493_v6 = vpop.eup %2492  ;;  %v1601_v34 = vadd.f32 1.0, %v2491_v17 }
 0x656   :  { %2502 = vrcp.f32 %v1588_v0 }
 0x657   :  { %2504 = vrcp.f32 %v1601_v34 }
 0x65c   :  { %v2495_v24 = vpop.eup %2494 }
 0x65d   :  { %v2497_v15 = vpop.eup %2496  ;;  %v1609_v27 = vmul.f32 %v2495_v24, %v2489_v32 }
 0x65e   :  { %v2499_v25 = vpop.eup %2498  ;;  %v1607_v30 = vmul.f32 %v2497_v15, %v3479_v8 }
 0x65f   :  { %v2501_v33 = vpop.eup %2500  ;;  %v1602_v39 = vadd.f32 1.0, %v2499_v25 }
 0x660   :  { %v3529_v28 = vadd.f32 %v1609_v27, %v1607_v30  ;;  %v1610_v31 = vmul.f32 %v2501_v33, %v2493_v6  ;;  %v2503_v35 = vpop.eup %2502 }
 0x661   :  { %v1608_v3 = vmul.f32 %v2503_v35, %v3483_v55  ;;  %v2505_v36 = vpop.eup %2504 }
 0x662   :  { %2506 = vtanh.f32 %v3529_v28 }
 0x663   :  { %v3533_v9 = vadd.f32 %v1610_v31, %v1608_v3  ;;  %2508 = vrcp.f32 %v1602_v39 }
 0x665   :  { %2510 = vtanh.f32 %v3533_v9 }
 0x66c   :  { %v2507_v16 = vpop.eup %2506 }
 0x66d   :  { %v2509_v8 = vpop.eup %2508  ;;  %v1615_v40 = vmul.f32 %v2507_v16, %v2505_v36 }
 0x66f   :  { %v2511_v37 = vpop.eup %2510 }
 0x670   :  { %v1616_v7 = vmul.f32 %v2511_v37, %v2509_v8 }
 0x672   :  { %v1632_v53 = vpack.c.bf16 %v1616_v7, %v1615_v40 }
 0x674   :  { %1666 = vmatmul.mubr.bf16.vlgmr.msra.gmra.mrb[48].mxu0 %v1632_v53  ;;  %1709 = vmatmul.mubr.bf16.vlgmr.msra.gmra.mrb[64].mxu1 %v1632_v53 }
 0x675   :  { %1792 = vmatpush1.bf16.msra.mxu0 %v3179_v58  ;;  %1835 = vmatpush1.bf16.msra.mxu1 %v3270_v59 }
 0x676   :  { %1793 = vmatprep.subr.bf16.mxu0 %v3186_v18  ;;  %1836 = vmatprep.subr.bf16.mxu1 %v3277_v47  ;;  %v3690_v18 = vld [vmem:[#allocation21_spill] sm:$0xff]  ;;  %v3692_v47 = vld [vmem:[#allocation22_spill] sm:$0xff] }
 0x677   :  { %1823 = vmatprep.mubr.bf16.mxu0 %v3676_v57  ;;  %1866 = vmatprep.mubr.bf16.mxu1 %v3676_v57  ;;  %v3689_v57 = vld [vmem:[#allocation5_spill] sm:$0xff] }
 0x678   :  { %v1624_v58 = vunpack.c.l.bf16 %v3689_v57 }
 0x679   :  { %1794 = vmatpush1.bf16.msra.mxu0 %v3195_v19  ;;  %1837 = vmatpush1.bf16.msra.mxu1 %v3286_v48  ;;  %v1626_v19 = vunpack.c.l.bf16 %v3690_v18  ;;  %v1627_v48 = vunpack.c.l.bf16 %v3692_v47 }
 0x67a   :  { %1795 = vmatprep.subr.bf16.mxu0 %v3202_v22  ;;  %1838 = vmatprep.subr.bf16.mxu1 %v3293_v20 }
 0x67d   :  { %1796 = vmatpush1.bf16.msra.mxu0 %v3209_v23  ;;  %1839 = vmatpush1.bf16.msra.mxu1 %v3300_v50 }
 0x67e   :  { %1797 = vmatprep.subr.bf16.mxu0 %v3216_v26  ;;  %1840 = vmatprep.subr.bf16.mxu1 %v3307_v2  ;;  %v3691_v26 = vld [vmem:[#allocation6_spill] sm:$0xff] }
 0x67f   :  { %v1625_v59 = vunpack.c.l.bf16 %v3691_v26 }
 0x681   :  { %1798 = vmatpush1.bf16.msra.mxu0 %v3313_v61  ;;  %1841 = vmatpush1.bf16.msra.mxu1 %v3319_v21  ;;  %v1628_v21 = vunpack.c.h.bf16 %v3689_v57 }
 0x682   :  { %1799 = vmatprep.subr.bf16.mxu0 %v3325_v54  ;;  %1842 = vmatprep.subr.bf16.mxu1 %v3331_v11  ;;  %v1630_v54 = vunpack.c.h.bf16 %v3690_v18  ;;  %v2618_v18 = vmov 0.0  }
 0x685   :  { %1800 = vmatpush1.bf16.msra.mxu0 %v3337_v4  ;;  %1843 = vmatpush1.bf16.msra.mxu1 %v3343_v13 }
 0x686   :  { %1801 = vmatprep.subr.bf16.mxu0 %v3349_v12  ;;  %1844 = vmatprep.subr.bf16.mxu1 %v3355_v5  ;;  %v1629_v5 = vunpack.c.h.bf16 %v3691_v26  ;;  %v2316_v26 = vld [vmem:[%s3631_s4 + $0x20] sm:$0xff]  }
 0x689   :  { %1802 = vmatpush1.bf16.msra.mxu0 %v3361_v63  ;;  %1845 = vmatpush1.bf16.msra.mxu1 %v3367_v10  ;;  %v1631_v63 = vunpack.c.h.bf16 %v3692_v47  ;;  %v2318_v47 = vld [vmem:[%s3631_s4 + $0x30] sm:$0xff]  }
 0x68a   :  { %1803 = vmatprep.subr.bf16.mxu0 %v3373_v38  ;;  %1846 = vmatprep.subr.bf16.mxu1 %v3379_v52 }
 0x68d   :  { %1804 = vmatpush1.bf16.msra.mxu0 %v3385_v56  ;;  %1847 = vmatpush1.bf16.msra.mxu1 %v3391_v29 }
 0x68e   :  { %1805 = vmatprep.subr.bf16.mxu0 %v3397_v49  ;;  %1848 = vmatprep.subr.bf16.mxu1 %v3403_v62 }
 0x691   :  { %1806 = vmatpush1.bf16.msra.mxu0 %v3409_v60  ;;  %1849 = vmatpush1.bf16.msra.mxu1 %v3415_v14 }
 0x692   :  { %2216 = vmatprep.subr.bf16.mxu0 %v2618_v18 }
 0x747   :  { %v1667_v22 = vpop.f32.mrb[48].mxu0  ;;  %v1710_v23 = vpop.f32.mrb[64].mxu1 }
 0x748   :  { %v1719_v20 = vadd.f32 %v1667_v22, %v1624_v58  ;;  %v1721_v50 = vadd.f32 %v1710_v23, %v1626_v19  ;;  %v1669_v2 = vpop.f32.mrb[49].mxu0  ;;  %v1712_v61 = vpop.f32.mrb[65].mxu1  ;;  %v2313_v19 = vld [vmem:[%s3631_s4 + $0x8] sm:$0xff]   ;;  %v2314_v22 = vld [vmem:[%s3631_s4 + $0x10] sm:$0xff]   ;;  %v2315_v23 = vld [vmem:[%s3631_s4 + $0x18] sm:$0xff]  }
 0x749   :  { %v1720_v11 = vadd.f32 %v1669_v2, %v1625_v59  ;;  %v1722_v4 = vadd.f32 %v1712_v61, %v1627_v48  ;;  %v1671_v13 = vpop.f32.mrb[50].mxu0  ;;  %v1714_v12 = vpop.f32.mrb[66].mxu1  ;;  %v2317_v59 = vld [vmem:[%s3631_s4 + $0x28] sm:$0xff]   ;;  %v2319_v48 = vld [vmem:[%s3631_s4 + $0x38] sm:$0xff]   ;;  %v3694_v2 = vld [vmem:[#allocation23_spill] sm:$0xff] }
 0x74a   :  { %v2186_v10 = vmul.f32 -1.442695, %v1719_v20  ;;  %v1723_v38 = vadd.f32 %v1671_v13, %v1628_v21  ;;  %v1725_v52 = vadd.f32 %v1714_v12, %v1630_v54  ;;  %v1673_v56 = vpop.f32.mrb[51].mxu0  ;;  %v1716_v29 = vpop.f32.mrb[67].mxu1  ;;  %v3693_v20 = vld [vmem:[#allocation7_spill] sm:$0xff]  ;;  %v1784_v61 = vunpack.c.l.bf16 %v3694_v2  ;;  %v3696_v13 = vld [vmem:[#allocation24_spill] sm:$0xff] }
 0x74b   :  { %v2188_v49 = vmul.f32 -1.442695, %v1720_v11  ;;  %v1724_v62 = vadd.f32 %v1673_v56, %v1629_v5  ;;  %v1726_v60 = vadd.f32 %v1716_v29, %v1631_v63  ;;  %v2190_v51 = vmul.f32 -1.442695, %v1722_v4  ;;  %v3695_v11 = vld [vmem:[#allocation8_spill] sm:$0xff] }
 0x74c   :  { %2512 = vpow2.f32 %v2186_v10  ;;  %v2187_v14 = vmul.f32 -1.442695, %v1723_v38  ;;  %v1783_v4 = vunpack.c.l.bf16 %v3695_v11  ;;  %v1785_v12 = vunpack.c.l.bf16 %v3696_v13 }
 0x74d   :  { %2514 = vpow2.f32 %v2188_v49  ;;  %v2189_v55 = vmul.f32 -1.442695, %v1724_v62  ;;  %v2191_v43 = vmul.f32 -1.442695, %v1726_v60  ;;  %v1788_v56 = vunpack.c.h.bf16 %v3694_v2 }
 0x74e   :  { %2516 = vpow2.f32 %v2187_v14  ;;  %v1787_v14 = vunpack.c.h.bf16 %v3695_v11 }
 0x74f   :  { %2518 = vpow2.f32 %v2189_v55  ;;  %v1789_v55 = vunpack.c.h.bf16 %v3696_v13 }
 0x750   :  { %2520 = vtanh.f32 %v1721_v50  ;;  %v1782_v50 = vunpack.c.l.bf16 %v3693_v20 }
 0x751   :  { %2522 = vpow2.f32 %v2190_v51 }
 0x752   :  { %2524 = vtanh.f32 %v1725_v52  ;;  %v1786_v52 = vunpack.c.h.bf16 %v3693_v20 }
 0x756   :  { %v2513_v41 = vpop.eup %2512 }
 0x757   :  { %v2515_v45 = vpop.eup %2514  ;;  %v1733_v42 = vadd.f32 1.0, %v2513_v41 }
 0x758   :  { %v1745_v44 = vadd.f32 1.0, %v2515_v45  ;;  %v2517_v46 = vpop.eup %2516 }
 0x759   :  { %2526 = vrcp.f32 %v1733_v42  ;;  %v1734_v1 = vadd.f32 1.0, %v2517_v46  ;;  %v2519_v0 = vpop.eup %2518 }
 0x75a   :  { %2528 = vrcp.f32 %v1745_v44  ;;  %v1746_v32 = vadd.f32 1.0, %v2519_v0  ;;  %v2521_v17 = vpop.eup %2520 }
 0x75b   :  { %2530 = vpow2.f32 %v2191_v43  ;;  %v2523_v6 = vpop.eup %2522 }
 0x75c   :  { %2532 = vrcp.f32 %v1734_v1  ;;  %v2525_v24 = vpop.eup %2524  ;;  %v1759_v31 = vadd.f32 1.0, %v2523_v6 }
 0x75d   :  { %2534 = vrcp.f32 %v1746_v32 }
 0x75e   :  { %2536 = vrcp.f32 %v1759_v31 }
 0x763   :  { %v2527_v15 = vpop.eup %2526 }
 0x764   :  { %v2529_v27 = vpop.eup %2528  ;;  %v1767_v25 = vmul.f32 %v2527_v15, %v2521_v17 }
 0x765   :  { %v2531_v30 = vpop.eup %2530  ;;  %v1765_v33 = vmul.f32 %v2529_v27, %v3529_v28 }
 0x766   :  { %v2533_v34 = vpop.eup %2532  ;;  %v1760_v36 = vadd.f32 1.0, %v2531_v30 }
 0x767   :  { %v3577_v35 = vadd.f32 %v1767_v25, %v1765_v33  ;;  %v1768_v39 = vmul.f32 %v2533_v34, %v2525_v24  ;;  %v2535_v3 = vpop.eup %2534 }
 0x768   :  { %v1766_v16 = vmul.f32 %v2535_v3, %v3533_v9  ;;  %v2537_v37 = vpop.eup %2536  ;;  %v2312_v9 = vld [vmem:[%s3631_s4] sm:$0xff]  }
 0x769   :  { %2538 = vtanh.f32 %v3577_v35 }
 0x76a   :  { %v3581_v8 = vadd.f32 %v1768_v39, %v1766_v16  ;;  %2540 = vrcp.f32 %v1760_v36 }
 0x76c   :  { %2542 = vtanh.f32 %v3581_v8 }
 0x773   :  { %v2539_v40 = vpop.eup %2538 }
 0x774   :  { %v2541_v28 = vpop.eup %2540  ;;  %v1773_v53 = vmul.f32 %v2539_v40, %v2537_v37 }
 0x776   :  { %v2543_v7 = vpop.eup %2542 }
 0x777   :  { %v1774_v57 = vmul.f32 %v2543_v7, %v2541_v28 }
 0x779   :  { %v1790_v58 = vpack.c.bf16 %v1774_v57, %v1773_v53 }
 0x77b   :  { %1824 = vmatmul.mubr.bf16.vlgmr.msra.gmra.mrb[52].mxu0 %v1790_v58  ;;  %1867 = vmatmul.mubr.bf16.vlgmr.msra.gmra.mrb[68].mxu1 %v1790_v58 }
 0x77c   :  { %2217 = vmatpush3.bf16.msra.mxu0 %v2312_v9  ;;  %2232 = vmatprep.mubr.msk.bf16.mxu0 %vm2619_vm1, %v2618_v18 }
 0x77d   :  { %2218 = vmatprep.subr.bf16.mxu0 %v2618_v18 }
 0x780   :  { %2219 = vmatpush3.bf16.msra.mxu0 %v2313_v19 }
 0x781   :  { %2220 = vmatprep.subr.bf16.mxu0 %v2618_v18 }
 0x784   :  { %2221 = vmatpush3.bf16.msra.mxu0 %v2314_v22 }
 0x785   :  { %2222 = vmatprep.subr.bf16.mxu0 %v2618_v18 }
 0x788   :  { %2223 = vmatpush3.bf16.msra.mxu0 %v2315_v23 }
 0x789   :  { %2224 = vmatprep.subr.bf16.mxu0 %v2618_v18 }
 0x78c   :  { %2225 = vmatpush3.bf16.msra.mxu0 %v2316_v26 }
 0x78d   :  { %2226 = vmatprep.subr.bf16.mxu0 %v2618_v18 }
 0x790   :  { %2227 = vmatpush3.bf16.msra.mxu0 %v2317_v59 }
 0x791   :  { %2228 = vmatprep.subr.bf16.mxu0 %v2618_v18 }
 0x794   :  { %2229 = vmatpush3.bf16.msra.mxu0 %v2318_v47 }
 0x795   :  { %2230 = vmatprep.subr.bf16.mxu0 %v2618_v18 }
 0x798   :  { %2231 = vmatpush3.bf16.msra.mxu0 %v2319_v48 }
 0x84e   :  { %v1825_v21 = vpop.f32.mrb[52].mxu0  ;;  %v1868_v54 = vpop.f32.mrb[68].mxu1 }
 0x84f   :  { %v1877_v5 = vadd.f32 %v1825_v21, %v1782_v50  ;;  %v1879_v63 = vadd.f32 %v1868_v54, %v1784_v61  ;;  %v1827_v10 = vpop.f32.mrb[53].mxu0  ;;  %v1870_v38 = vpop.f32.mrb[69].mxu1 }
 0x850   :  { %v1878_v29 = vadd.f32 %v1827_v10, %v1783_v4  ;;  %v1880_v49 = vadd.f32 %v1870_v38, %v1785_v12  ;;  %v1829_v62 = vpop.f32.mrb[54].mxu0  ;;  %v1872_v60 = vpop.f32.mrb[70].mxu1 }
 0x851   :  { %v2192_v51 = vmul.f32 -1.442695, %v1877_v5  ;;  %v1881_v41 = vadd.f32 %v1829_v62, %v1786_v52  ;;  %v1883_v45 = vadd.f32 %v1872_v60, %v1788_v56  ;;  %v1831_v42 = vpop.f32.mrb[55].mxu0  ;;  %v1874_v43 = vpop.f32.mrb[71].mxu1 }
 0x852   :  { %v2194_v44 = vmul.f32 -1.442695, %v1878_v29  ;;  %v1882_v46 = vadd.f32 %v1831_v42, %v1787_v14  ;;  %v1884_v1 = vadd.f32 %v1874_v43, %v1789_v55  ;;  %v2196_v17 = vmul.f32 -1.442695, %v1880_v49 }
 0x853   :  { %2544 = vpow2.f32 %v2192_v51  ;;  %v2193_v0 = vmul.f32 -1.442695, %v1881_v41 }
 0x854   :  { %2546 = vpow2.f32 %v2194_v44  ;;  %v2195_v32 = vmul.f32 -1.442695, %v1882_v46  ;;  %v2197_v27 = vmul.f32 -1.442695, %v1884_v1 }
 0x855   :  { %2548 = vpow2.f32 %v2193_v0 }
 0x856   :  { %2550 = vpow2.f32 %v2195_v32 }
 0x857   :  { %2552 = vtanh.f32 %v1879_v63 }
 0x858   :  { %2554 = vpow2.f32 %v2196_v17 }
 0x859   :  { %2556 = vtanh.f32 %v1883_v45 }
 0x85d   :  { %v2545_v6 = vpop.eup %2544 }
 0x85e   :  { %v2547_v24 = vpop.eup %2546  ;;  %v1891_v15 = vadd.f32 1.0, %v2545_v6 }
 0x85f   :  { %v1903_v25 = vadd.f32 1.0, %v2547_v24  ;;  %v2549_v30 = vpop.eup %2548 }
 0x860   :  { %2558 = vrcp.f32 %v1891_v15  ;;  %v1892_v33 = vadd.f32 1.0, %v2549_v30  ;;  %v2551_v34 = vpop.eup %2550 }
 0x861   :  { %2560 = vrcp.f32 %v1903_v25  ;;  %v1904_v31 = vadd.f32 1.0, %v2551_v34  ;;  %v2553_v39 = vpop.eup %2552 }
 0x862   :  { %2562 = vpow2.f32 %v2197_v27  ;;  %v2555_v3 = vpop.eup %2554 }
 0x863   :  { %2564 = vrcp.f32 %v1892_v33  ;;  %v2557_v36 = vpop.eup %2556  ;;  %v1917_v28 = vadd.f32 1.0, %v2555_v3 }
 0x864   :  { %2566 = vrcp.f32 %v1904_v31 }
 0x865   :  { %2568 = vrcp.f32 %v1917_v28 }
 0x86a   :  { %v2559_v16 = vpop.eup %2558 }
 0x86b   :  { %v2561_v37 = vpop.eup %2560  ;;  %v1925_v40 = vmul.f32 %v2559_v16, %v2553_v39 }
 0x86c   :  { %v2563_v7 = vpop.eup %2562  ;;  %v1923_v53 = vmul.f32 %v2561_v37, %v3577_v35  ;;  %v2198_v35 = vld [vmem:[%s3632_s5] ss:$0 sm:$0xff] }
 0x86d   :  { %v2565_v57 = vpop.eup %2564  ;;  %v1918_v19 = vadd.f32 1.0, %v2563_v7 }
 0x86e   :  { %v1927_v58 = vadd.f32 %v1925_v40, %v1923_v53  ;;  %v1926_v9 = vmul.f32 %v2565_v57, %v2557_v36  ;;  %v2567_v18 = vpop.eup %2566 }
 0x86f   :  { %v1924_v22 = vmul.f32 %v2567_v18, %v3581_v8  ;;  %v2569_v26 = vpop.eup %2568 }
 0x870   :  { %2570 = vtanh.f32 %v1927_v58 }
 0x871   :  { %v1928_v23 = vadd.f32 %v1926_v9, %v1924_v22  ;;  %2572 = vrcp.f32 %v1918_v19 }
 0x873   :  { %2574 = vtanh.f32 %v1928_v23 }
 0x87a   :  { %v2571_v59 = vpop.eup %2570 }
 0x87b   :  { %v1931_v47 = vmul.f32 %v2571_v59, %v2569_v26  ;;  %v2573_v48 = vpop.eup %2572 }
 0x87d   :  { %v2575_v20 = vpop.eup %2574 }
 0x87e   :  { %v1932_v50 = vmul.f32 %v2575_v20, %v2573_v48 }
 0x880   :  { %v1942_v2 = vpack.c.bf16 %v1932_v50, %v1931_v47 }
 0x882   :  { %2233 = vmatmul.mubr.bf16.vlgmr.msra.gmra.mrb[56].mxu0 %v1942_v2 }
 0x955   :  { %v2048_v61 = vpop.f32.mrb[56].mxu0 }
 0x956   :  { %v2049_v21 = vadd.f32 %v2198_v35, %v2048_v61  ;;  %v2234_v54 = vpop.f32.mrb[57].mxu0 }
 0x957   :  { %v2051_v11 = vpop.f32.mrb[58].mxu0 }
 0x958   :  { %2055 = vmax.xlane.f32.xlu0 %v2049_v21  ;;  %v2235_v8 = vpop.f32.mrb[59].mxu0  ;;  %v2052_v4 = vadd.f32 %v2198_v35, %v2051_v11 }
 0x95c   :  { %2057 = vmax.xlane.f32.xlu0 %v2052_v4 }
 0x9e5   :  { %v2056_v13 = vpop.xlane.xlu0 %2055 }
 0x9e6   :  { %v2059_v12 = vsub.f32 %v2049_v21, %v2056_v13 }
 0x9e8   :  { %v2061_v5 = vmul.f32 1.442695, %v2059_v12 }
 0x9e9   :  { %v2058_v63 = vpop.xlane.xlu0 %2057 }
 0x9ea   :  { %2576 = vpow2.f32 %v2061_v5  ;;  %v2060_v10 = vsub.f32 %v2052_v4, %v2058_v63 }
 0x9ec   :  { %v2063_v38 = vmul.f32 1.442695, %v2060_v10 }
 0x9ee   :  { %2578 = vpow2.f32 %v2063_v38 }
 0x9f4   :  { %v2577_v52 = vpop.eup %2576 }
 0x9f5   :  { %2065 = vadd.xlane.f32.xlu1 %v2577_v52 }
 0x9f8   :  { %v2579_v56 = vpop.eup %2578 }
 0x9f9   :  { %2067 = vadd.xlane.f32.xlu1 %v2579_v56 }
 0xa82   :  { %v2066_v29 = vpop.xlane.xlu1 %2065 }
 0xa83   :  { %2580 = vrcp.f32 %v2066_v29 }
 0xa86   :  { %v2068_v49 = vpop.xlane.xlu1 %2067 }
 0xa87   :  { %2582 = vrcp.f32 %v2068_v49 }
 0xa8d   :  { %v2581_v62 = vpop.eup %2580 }
 0xa8e   :  { %v2070_v60 = vmul.f32 %v2581_v62, %v2577_v52 }
 0xa90   :  { %2073 = vst [vmem:[%s3633_s6] sm:$0xff] %v2070_v60 }
 0xa91   :  { %v2583_v14 = vpop.eup %2582 }
 0xa92   :  { %v2072_v55 = vmul.f32 %v2583_v14, %v2579_v56 }
 0xa94   :  { %2074 = vst [vmem:[%s3633_s6 + $0x8] sm:$0xff] %v2072_v55 }

</bundles_post_ra>
